<compile_context>
chip_gen: v5e
topology: v5e:2x2
jax: 0.10.0
libtpu: 0.0.40
codegen_flags: <defaults>
</compile_context>

<pallas_src>
import jax
import jax.numpy as jnp
from jax.experimental import pallas as pl
from jax.experimental.pallas import tpu as pltpu


def _silu(x):
    # x * sigmoid(x) == x / (1 + exp(-x)), computed in f32 (EUP exp + divide).
    return x / (1.0 + jnp.exp(-x))


def _time_proj_kernel(pe_ref, boxes_ref, mask_ref, null_ref,
                      w1a_ref, w1b_ref, b1_ref,
                      w2_ref, b2_ref,
                      w3_ref, b3_ref,
                      o_ref):
    # Masked mix of positive embeddings with the learned null feature.
    m = mask_ref[...].astype(jnp.float32)                      # (TM, 1)
    pe = pe_ref[...].astype(jnp.float32)                       # (TM, P)
    null = null_ref[...].astype(jnp.float32)                   # (1,  P)
    pe_mixed = pe * m + (1.0 - m) * null                       # (TM, P)

    # Layer 1: cat([pe_mixed, boxes]) @ W1 + b1, as two matmuls (split W1).
    h = (jnp.dot(pe_mixed.astype(w1a_ref.dtype), w1a_ref[...],
                 preferred_element_type=jnp.float32)
         + jnp.dot(boxes_ref[...].astype(w1b_ref.dtype), w1b_ref[...],
                   preferred_element_type=jnp.float32)
         + b1_ref[...].astype(jnp.float32))
    h = _silu(h)

    # Layer 2
    h = (jnp.dot(h.astype(w2_ref.dtype), w2_ref[...],
                 preferred_element_type=jnp.float32)
         + b2_ref[...].astype(jnp.float32))
    h = _silu(h)

    # Layer 3
    out = (jnp.dot(h.astype(w3_ref.dtype), w3_ref[...],
                   preferred_element_type=jnp.float32)
           + b3_ref[...].astype(jnp.float32))
    o_ref[...] = out.astype(o_ref.dtype)


def time_proj_model(boxes, masks, positive_embeddings, null_positive_feature,
                    w1, b1, w2, b2, w3, b3, *, tm_max=256):
    """boxes: [B, N, T]; masks: [B, N]; positive_embeddings: [B, N, P].

    Weights are stored input-major (torch Linear weight transposed):
      w1: [P + T, H], w2: [H, H], w3: [H, O]; biases are 1-D. Returns [B, N, O].
    """
    B, N, T = boxes.shape
    P = positive_embeddings.shape[-1]
    H = w1.shape[1]
    O = w3.shape[1]
    M = B * N
    out_dtype = positive_embeddings.dtype

    pe = positive_embeddings.reshape(M, P)
    bx = boxes.reshape(M, T)
    mk = masks.reshape(M, 1).astype(jnp.float32)

    # Pad rows to a sublane-friendly multiple; pick one big tile when it fits.
    m_pad = max(8, 8 * pl.cdiv(M, 8))
    tm = min(m_pad, tm_max)
    m_pad = tm * pl.cdiv(m_pad, tm)
    if m_pad != M:
        pad = m_pad - M
        pe = jnp.pad(pe, ((0, pad), (0, 0)))
        bx = jnp.pad(bx, ((0, pad), (0, 0)))
        mk = jnp.pad(mk, ((0, pad), (0, 0)))
    num_tiles = m_pad // tm

    # Split W1 so the lane-axis concat never materializes inside the kernel.
    w1a = w1[:P, :]
    w1b = w1[P:, :]

    null2d = null_positive_feature.reshape(1, P)
    b1_2d = b1.reshape(1, H)
    b2_2d = b2.reshape(1, H)
    b3_2d = b3.reshape(1, O)

    def rows(i):
        return (i, 0)

    def whole(i):
        return (0, 0)

    operands = (pe, bx, mk, null2d, w1a, w1b, b1_2d, w2, b2_2d, w3, b3_2d)
    flops = 2 * m_pad * (P * H + T * H + H * H + H * O)
    bytes_accessed = sum(int(a.size) * a.dtype.itemsize for a in operands)
    bytes_accessed += m_pad * O * jnp.dtype(out_dtype).itemsize

    out2d = pl.pallas_call(
        _time_proj_kernel,
        out_shape=jax.ShapeDtypeStruct((m_pad, O), out_dtype),
        grid_spec=pltpu.PrefetchScalarGridSpec(
            num_scalar_prefetch=0,
            grid=(num_tiles,),
            in_specs=[
                pl.BlockSpec((tm, P), rows),   # positive embeddings
                pl.BlockSpec((tm, T), rows),   # boxes / time embeds
                pl.BlockSpec((tm, 1), rows),   # masks
                pl.BlockSpec((1, P), whole),   # null positive feature
                pl.BlockSpec((P, H), whole),   # W1[:P]
                pl.BlockSpec((T, H), whole),   # W1[P:]
                pl.BlockSpec((1, H), whole),   # b1
                pl.BlockSpec((H, H), whole),   # W2
                pl.BlockSpec((1, H), whole),   # b2
                pl.BlockSpec((H, O), whole),   # W3
                pl.BlockSpec((1, O), whole),   # b3
            ],
            out_specs=pl.BlockSpec((tm, O), rows),
        ),
        compiler_params=pltpu.CompilerParams(
            # Single row tile stays on one TensorCore (weights fetched once);
            # only shard rows across cores when there is more than one tile.
            dimension_semantics=(
                ("parallel",) if num_tiles > 1 else ("arbitrary",))),
        cost_estimate=pl.CostEstimate(
            flops=flops,
            transcendentals=2 * m_pad * H,
            bytes_accessed=bytes_accessed),
    )(*operands)

    return out2d[:M].reshape(B, N, O)


def reference(boxes, masks, positive_embeddings, null, w1, b1, w2, b2, w3, b3):
    m = masks[..., None].astype(jnp.float32)
    pe = positive_embeddings * m + (1.0 - m) * null.reshape(1, 1, -1)
    x = jnp.concatenate([pe, boxes], axis=-1)
    h = x @ w1 + b1
    h = h * jax.nn.sigmoid(h)
    h = h @ w2 + b2
    h = h * jax.nn.sigmoid(h)
    return h @ w3 + b3


if __name__ == "__main__":
    # Small, module-consistent shapes: positive_len=192, frame_nums=64,
    # hidden=512 (fixed by the module), out_dim=256, batch=2, 8 tokens.
    positive_len = 192
    frame_nums = 64          # position_dim
    hidden = 512
    out_dim = 256
    B, N = 2, 8

    key = jax.random.PRNGKey(0)
    keys = jax.random.split(key, 9)

    boxes = jax.random.normal(keys[0], (B, N, frame_nums), jnp.float32)
    masks = (jax.random.uniform(keys[1], (B, N)) > 0.5).astype(jnp.float32)
    positive_embeddings = jax.random.normal(
        keys[2], (B, N, positive_len), jnp.float32)
    null_positive_feature = (
        jax.random.normal(keys[3], (positive_len,), jnp.float32) * 0.02)

    d_in = positive_len + frame_nums
    w1 = jax.random.normal(keys[4], (d_in, hidden), jnp.float32) / jnp.sqrt(d_in)
    b1 = jax.random.normal(keys[5], (hidden,), jnp.float32) * 0.01
    w2 = jax.random.normal(keys[6], (hidden, hidden), jnp.float32) / jnp.sqrt(hidden)
    b2 = jax.random.normal(keys[7], (hidden,), jnp.float32) * 0.01
    w3 = jax.random.normal(keys[8], (hidden, out_dim), jnp.float32) / jnp.sqrt(hidden)
    b3 = jnp.zeros((out_dim,), jnp.float32)

    out = time_proj_model(boxes, masks, positive_embeddings,
                          null_positive_feature, w1, b1, w2, b2, w3, b3)
    out = jax.block_until_ready(out)

    ref = reference(boxes, masks, positive_embeddings, null_positive_feature,
                    w1, b1, w2, b2, w3, b3)
    assert out.shape == (B, N, out_dim)
    assert jnp.allclose(out, ref, atol=2e-4, rtol=2e-4), float(
        jnp.max(jnp.abs(out - ref)))

    print("KERNEL_OK")
</pallas_src>

<mosaic_0001>
module attributes {stable_mosaic.version = 11 : i64} {
  func.func @_time_proj_kernel(%arg0: i32, %arg1: memref<16x192xf32, #tpu.memory_space<vmem>>, %arg2: memref<16x64xf32, #tpu.memory_space<vmem>>, %arg3: memref<16x1xf32, #tpu.memory_space<vmem>>, %arg4: memref<1x192xf32, #tpu.memory_space<vmem>>, %arg5: memref<192x512xf32, #tpu.memory_space<vmem>>, %arg6: memref<64x512xf32, #tpu.memory_space<vmem>>, %arg7: memref<1x512xf32, #tpu.memory_space<vmem>>, %arg8: memref<512x512xf32, #tpu.memory_space<vmem>>, %arg9: memref<1x512xf32, #tpu.memory_space<vmem>>, %arg10: memref<512x256xf32, #tpu.memory_space<vmem>>, %arg11: memref<1x256xf32, #tpu.memory_space<vmem>>, %arg12: memref<16x256xf32, #tpu.memory_space<vmem>>) attributes {dimension_semantics = [#tpu.dimension_semantics<arbitrary>], iteration_bounds = array<i64: 1>, scalar_prefetch = 0 : i64, scratch_operands = 0 : i64, tpu.core_type = #tpu.core_type<tc>, window_params = [{transform_indices = @transform_0, window_bounds = array<i64: 16, 192>}, {transform_indices = @transform_1, window_bounds = array<i64: 16, 64>}, {transform_indices = @transform_2, window_bounds = array<i64: 16, 1>}, {pipeline_mode = #tpu.pipeline_mode<synchronous>, transform_indices = @transform_3, window_bounds = array<i64: 1, 192>}, {pipeline_mode = #tpu.pipeline_mode<synchronous>, transform_indices = @transform_4, window_bounds = array<i64: 192, 512>}, {pipeline_mode = #tpu.pipeline_mode<synchronous>, transform_indices = @transform_5, window_bounds = array<i64: 64, 512>}, {pipeline_mode = #tpu.pipeline_mode<synchronous>, transform_indices = @transform_6, window_bounds = array<i64: 1, 512>}, {pipeline_mode = #tpu.pipeline_mode<synchronous>, transform_indices = @transform_7, window_bounds = array<i64: 512, 512>}, {pipeline_mode = #tpu.pipeline_mode<synchronous>, transform_indices = @transform_8, window_bounds = array<i64: 1, 512>}, {pipeline_mode = #tpu.pipeline_mode<synchronous>, transform_indices = @transform_9, window_bounds = array<i64: 512, 256>}, {pipeline_mode = #tpu.pipeline_mode<synchronous>, transform_indices = @transform_10, window_bounds = array<i64: 1, 256>}, {transform_indices = @transform_11, window_bounds = array<i64: 16, 256>}]} {
    %c0 = arith.constant 0 : index
    %c0_0 = arith.constant 0 : index
    %0 = vector.load %arg3[%c0, %c0_0] : memref<16x1xf32, #tpu.memory_space<vmem>>, vector<16x1xf32>
    %c0_1 = arith.constant 0 : index
    %c0_2 = arith.constant 0 : index
    %1 = vector.load %arg1[%c0_1, %c0_2] : memref<16x192xf32, #tpu.memory_space<vmem>>, vector<16x192xf32>
    %c0_3 = arith.constant 0 : index
    %c0_4 = arith.constant 0 : index
    %2 = vector.load %arg4[%c0_3, %c0_4] : memref<1x192xf32, #tpu.memory_space<vmem>>, vector<1x192xf32>
    %3 = vector.broadcast %0 : vector<16x1xf32> to vector<16x192xf32>
    %4 = arith.mulf %1, %3 : vector<16x192xf32>
    %cst = arith.constant 1.000000e+00 : f32
    %5 = vector.broadcast %cst : f32 to vector<16x1xf32>
    %6 = arith.subf %5, %0 : vector<16x1xf32>
    %7 = vector.broadcast %6 : vector<16x1xf32> to vector<16x192xf32>
    %8 = vector.broadcast %2 : vector<1x192xf32> to vector<16x192xf32>
    %9 = arith.mulf %7, %8 : vector<16x192xf32>
    %10 = arith.addf %4, %9 : vector<16x192xf32>
    %c0_5 = arith.constant 0 : index
    %c0_6 = arith.constant 0 : index
    %11 = vector.load %arg5[%c0_5, %c0_6] : memref<192x512xf32, #tpu.memory_space<vmem>>, vector<192x512xf32>
    %cst_7 = arith.constant dense<0.000000e+00> : vector<16x512xf32>
    %12 = tpu.matmul %10, %11, %cst_7 {dimension_numbers = #tpu.dot_dimension_numbers<[1], [0], [0], [1], [0, 0, 1, 1], [], []>} : vector<16x192xf32>, vector<192x512xf32>, vector<16x512xf32> -> vector<16x512xf32>
    %c0_8 = arith.constant 0 : index
    %c0_9 = arith.constant 0 : index
    %13 = vector.load %arg2[%c0_8, %c0_9] : memref<16x64xf32, #tpu.memory_space<vmem>>, vector<16x64xf32>
    %c0_10 = arith.constant 0 : index
    %c0_11 = arith.constant 0 : index
    %14 = vector.load %arg6[%c0_10, %c0_11] : memref<64x512xf32, #tpu.memory_space<vmem>>, vector<64x512xf32>
    %cst_12 = arith.constant dense<0.000000e+00> : vector<16x512xf32>
    %15 = tpu.matmul %13, %14, %cst_12 {dimension_numbers = #tpu.dot_dimension_numbers<[1], [0], [0], [1], [0, 0, 1, 1], [], []>} : vector<16x64xf32>, vector<64x512xf32>, vector<16x512xf32> -> vector<16x512xf32>
    %16 = arith.addf %12, %15 : vector<16x512xf32>
    %c0_13 = arith.constant 0 : index
    %c0_14 = arith.constant 0 : index
    %17 = vector.load %arg7[%c0_13, %c0_14] : memref<1x512xf32, #tpu.memory_space<vmem>>, vector<1x512xf32>
    %18 = vector.broadcast %17 : vector<1x512xf32> to vector<16x512xf32>
    %19 = arith.addf %16, %18 : vector<16x512xf32>
    %cst_15 = arith.constant 0.000000e+00 : f32
    %20 = vector.broadcast %cst_15 : f32 to vector<16x512xf32>
    %21 = arith.subf %20, %19 : vector<16x512xf32>
    %22 = math.exp %21 : vector<16x512xf32>
    %cst_16 = arith.constant 1.000000e+00 : f32
    %23 = vector.broadcast %cst_16 : f32 to vector<16x512xf32>
    %24 = arith.addf %23, %22 : vector<16x512xf32>
    %25 = arith.divf %19, %24 : vector<16x512xf32>
    %c0_17 = arith.constant 0 : index
    %c0_18 = arith.constant 0 : index
    %26 = vector.load %arg8[%c0_17, %c0_18] : memref<512x512xf32, #tpu.memory_space<vmem>>, vector<512x512xf32>
    %cst_19 = arith.constant dense<0.000000e+00> : vector<16x512xf32>
    %27 = tpu.matmul %25, %26, %cst_19 {dimension_numbers = #tpu.dot_dimension_numbers<[1], [0], [0], [1], [0, 0, 1, 1], [], []>} : vector<16x512xf32>, vector<512x512xf32>, vector<16x512xf32> -> vector<16x512xf32>
    %c0_20 = arith.constant 0 : index
    %c0_21 = arith.constant 0 : index
    %28 = vector.load %arg9[%c0_20, %c0_21] : memref<1x512xf32, #tpu.memory_space<vmem>>, vector<1x512xf32>
    %29 = vector.broadcast %28 : vector<1x512xf32> to vector<16x512xf32>
    %30 = arith.addf %27, %29 : vector<16x512xf32>
    %cst_22 = arith.constant 0.000000e+00 : f32
    %31 = vector.broadcast %cst_22 : f32 to vector<16x512xf32>
    %32 = arith.subf %31, %30 : vector<16x512xf32>
    %33 = math.exp %32 : vector<16x512xf32>
    %cst_23 = arith.constant 1.000000e+00 : f32
    %34 = vector.broadcast %cst_23 : f32 to vector<16x512xf32>
    %35 = arith.addf %34, %33 : vector<16x512xf32>
    %36 = arith.divf %30, %35 : vector<16x512xf32>
    %c0_24 = arith.constant 0 : index
    %c0_25 = arith.constant 0 : index
    %37 = vector.load %arg10[%c0_24, %c0_25] : memref<512x256xf32, #tpu.memory_space<vmem>>, vector<512x256xf32>
    %cst_26 = arith.constant dense<0.000000e+00> : vector<16x256xf32>
    %38 = tpu.matmul %36, %37, %cst_26 {dimension_numbers = #tpu.dot_dimension_numbers<[1], [0], [0], [1], [0, 0, 1, 1], [], []>} : vector<16x512xf32>, vector<512x256xf32>, vector<16x256xf32> -> vector<16x256xf32>
    %c0_27 = arith.constant 0 : index
    %c0_28 = arith.constant 0 : index
    %39 = vector.load %arg11[%c0_27, %c0_28] : memref<1x256xf32, #tpu.memory_space<vmem>>, vector<1x256xf32>
    %40 = vector.broadcast %39 : vector<1x256xf32> to vector<16x256xf32>
    %41 = arith.addf %38, %40 : vector<16x256xf32>
    %c0_29 = arith.constant 0 : index
    %c0_30 = arith.constant 0 : index
    %42 = vector.load %arg12[%c0_29, %c0_30] : memref<16x256xf32, #tpu.memory_space<vmem>>, vector<16x256xf32>
    tpu.vector_store %arg12[%c0_29, %c0_30], %41 {strides = array<i32>} : memref<16x256xf32, #tpu.memory_space<vmem>>, vector<16x256xf32>,
    return
  }
  func.func @transform_0(%arg0: i32) -> (i32, i32) {
    %c0_i32 = arith.constant 0 : i32
    %c0_i32_0 = arith.constant 0 : i32
    return %arg0, %c0_i32 : i32, i32
  }
  func.func @transform_1(%arg0: i32) -> (i32, i32) {
    %c0_i32 = arith.constant 0 : i32
    %c0_i32_0 = arith.constant 0 : i32
    return %arg0, %c0_i32 : i32, i32
  }
  func.func @transform_2(%arg0: i32) -> (i32, i32) {
    %c0_i32 = arith.constant 0 : i32
    %c0_i32_0 = arith.constant 0 : i32
    return %arg0, %c0_i32 : i32, i32
  }
  func.func @transform_3(%arg0: i32) -> (i32, i32) {
    %c0_i32 = arith.constant 0 : i32
    %c0_i32_0 = arith.constant 0 : i32
    %c0_i32_1 = arith.constant 0 : i32
    return %c0_i32, %c0_i32_0 : i32, i32
  }
  func.func @transform_4(%arg0: i32) -> (i32, i32) {
    %c0_i32 = arith.constant 0 : i32
    %c0_i32_0 = arith.constant 0 : i32
    %c0_i32_1 = arith.constant 0 : i32
    return %c0_i32, %c0_i32_0 : i32, i32
  }
  func.func @transform_5(%arg0: i32) -> (i32, i32) {
    %c0_i32 = arith.constant 0 : i32
    %c0_i32_0 = arith.constant 0 : i32
    %c0_i32_1 = arith.constant 0 : i32
    return %c0_i32, %c0_i32_0 : i32, i32
  }
  func.func @transform_6(%arg0: i32) -> (i32, i32) {
    %c0_i32 = arith.constant 0 : i32
    %c0_i32_0 = arith.constant 0 : i32
    %c0_i32_1 = arith.constant 0 : i32
    return %c0_i32, %c0_i32_0 : i32, i32
  }
  func.func @transform_7(%arg0: i32) -> (i32, i32) {
    %c0_i32 = arith.constant 0 : i32
    %c0_i32_0 = arith.constant 0 : i32
    %c0_i32_1 = arith.constant 0 : i32
    return %c0_i32, %c0_i32_0 : i32, i32
  }
  func.func @transform_8(%arg0: i32) -> (i32, i32) {
    %c0_i32 = arith.constant 0 : i32
    %c0_i32_0 = arith.constant 0 : i32
    %c0_i32_1 = arith.constant 0 : i32
    return %c0_i32, %c0_i32_0 : i32, i32
  }
  func.func @transform_9(%arg0: i32) -> (i32, i32) {
    %c0_i32 = arith.constant 0 : i32
    %c0_i32_0 = arith.constant 0 : i32
    %c0_i32_1 = arith.constant 0 : i32
    return %c0_i32, %c0_i32_0 : i32, i32
  }
  func.func @transform_10(%arg0: i32) -> (i32, i32) {
    %c0_i32 = arith.constant 0 : i32
    %c0_i32_0 = arith.constant 0 : i32
    %c0_i32_1 = arith.constant 0 : i32
    return %c0_i32, %c0_i32_0 : i32, i32
  }
  func.func @transform_11(%arg0: i32) -> (i32, i32) {
    %c0_i32 = arith.constant 0 : i32
    %c0_i32_0 = arith.constant 0 : i32
    return %arg0, %c0_i32 : i32, i32
  }
}

</mosaic_0001>

<bundles_post_ra>
// kernel: tpu_custom_call.1
= control target key start
LH: loop header
LB: loop body
LE: loop exit
PB: predicated region body
PF: predicated region fallthrough
CT: control target
= control target key end

     0   :  { %16 = vsyncpa [#allocation3], 0  ;;  %s2651_s0 = inlined_call_operand.hbm [shape: f32[16,192], index: 0, kind: input, shape index: {}]   ;;  %s2652_s1 = inlined_call_operand.vmem [shape: f32[16,64], index: 1, kind: input, shape index: {}]   ;;  %s2653_s2 = inlined_call_operand.vmem [shape: f32[16,1], index: 2, kind: input, shape index: {}]   ;;  %s2654_s3 = inlined_call_operand.hbm [shape: f32[1,192], index: 3, kind: input, shape index: {}]   ;;  %s2655_s4 = inlined_call_operand.hbm [shape: f32[192,512], index: 4, kind: input, shape index: {}]   ;;  %s2656_s5 = inlined_call_operand.hbm [shape: f32[64,512], index: 5, kind: input, shape index: {}]   ;;  %s2657_s6 = inlined_call_operand.vmem [shape: f32[1,512], index: 6, kind: input, shape index: {}]   ;;  %s2658_s7 = inlined_call_operand.hbm [shape: f32[512,512], index: 7, kind: input, shape index: {}]   ;;  %s2659_s8 = inlined_call_operand.vmem [shape: f32[1,512], index: 8, kind: input, shape index: {}]   ;;  %s2660_s9 = inlined_call_operand.hbm [shape: f32[512,256], index: 9, kind: input, shape index: {}]   ;;  %s2661_s10 = inlined_call_operand.vmem [shape: f32[1,256], index: 10, kind: input, shape index: {}]   ;;  %s2662_s11 = inlined_call_operand.hbm [shape: f32[16,256], index: 11, kind: output, shape index: {}]  }
   0x1   :  { %17 = vsyncpa [#allocation6], 0 }
   0x2   :  { %18 = vsyncpa [#allocation9], 0 }
   0x3   :  { %19 = vsyncpa [#allocation12], 0  ;;  %s43_s19 = sshll.u32 %s2654_s3, 4  ;;  %s44_s19 = int_to_ptr.hbm [resolvable:$true] %s43_s19 }
   0x4   :  { %20 = vsyncpa [#allocation4], 0  ;;  %s2168_s20 = smov [#allocation5]   ;;  %s66_s24 = sshll.u32 %s2656_s5, 4  ;;  %s67_s24 = int_to_ptr.hbm [resolvable:$true] %s66_s24 }
   0x5   :  { %s45_s21 = sshll.u32 %s2168_s20, 4  ;;  %s2169_s25 = smov [#allocation8]   ;;  %s46_s21 = int_to_ptr.vmem [resolvable:$true] %s45_s21 }
   0x6   :  { %48 = dma.hbm_to_vmem [thread:$0]  %s44_s19, 32, %s46_s21, [#allocation6]  }
   0x7   :  { %s68_s26 = sshll.u32 %s2169_s25, 4  ;;  %s25_s29 = sshll.u32 %s2651_s0, 4  ;;  %s69_s26 = int_to_ptr.vmem [resolvable:$true] %s68_s26  ;;  %s26_s29 = int_to_ptr.hbm [resolvable:$true] %s25_s29 }
   0x8   :  { %s2170_s3 = smov 512   ;;  %s2171_s30 = smov 32  }
   0x9   :  { %74 = dma.hbm_to_vmem [thread:$0]  %s67_s24, 4096, %s69_s26, [#allocation9], %s2170_s3, %s2170_s3, %s2171_s30  }
   0xa   :  { %s2172_s12 = smov [#allocation2]   ;;  %s53_s16 = sshll.u32 %s2655_s4, 4  ;;  %s54_s16 = int_to_ptr.hbm [resolvable:$true] %s53_s16 }
   0xb   :  { %s27_s13 = sshll.u32 %s2172_s12, 4  ;;  %s2173_s5 = smov 256   ;;  %s28_s13 = int_to_ptr.vmem [resolvable:$true] %s27_s13 }
   0xc   :  { %s2174_s17 = smov 16   ;;  %s2175_s0 = smov [#allocation7]  }
   0xd   :  { %33 = dma.hbm_to_vmem [thread:$0]  %s26_s29, 512, %s28_s13, [#allocation3], %s2173_s5, %s2173_s5, %s2174_s17  }
   0xe   :  { %s55_s18 = sshll.u32 %s2175_s0, 4  ;;  %s81_s21 = sshll.u32 %s2658_s7, 4  ;;  %s56_s18 = int_to_ptr.vmem [resolvable:$true] %s55_s18  ;;  %s82_s21 = int_to_ptr.hbm [resolvable:$true] %s81_s21 }
   0xf   :  { %61 = dma.hbm_to_vmem [thread:$0]  %s54_s16, 12288, %s56_s18, [#allocation6], %s2170_s3, %s2170_s3, %s2171_s30  }
  0x10   :  { %s96_s4 = sshll.u32 %s2660_s9, 4  ;;  %s2176_s24 = smov [#allocation10]   ;;  %s97_s4 = int_to_ptr.hbm [resolvable:$true] %s96_s4 }
  0x11   :  { %s83_s25 = sshll.u32 %s2176_s24, 4  ;;  %s2177_s26 = smov [#allocation11]   ;;  %s84_s25 = int_to_ptr.vmem [resolvable:$true] %s83_s25 }
  0x12   :  { %89 = dma.hbm_to_vmem [thread:$0]  %s82_s21, 32768, %s84_s25, [#allocation9], %s2170_s3, %s2170_s3, %s2171_s30  }
  0x13   :  { %s98_s27 = sshll.u32 %s2177_s26, 4  ;;  %s99_s27 = int_to_ptr.vmem [resolvable:$true] %s98_s27 }
  0x14   :  { %104 = dma.hbm_to_vmem [thread:$0]  %s97_s4, 16384, %s99_s27, [#allocation12], %s2173_s5, %s2173_s5, %s2174_s17  }
  0x15   :  { %2158 = dma.done.wait [#allocation3], 512  }
  0x16   :  { %2159 = vsyncadd [#allocation3], 4294966784 }
  0x17   :  { %2160 = dma.done.wait [#allocation6], 12320  }
  0x18   :  { %2161 = vsyncadd [#allocation6], 4294954976 }
  0x19   :  { %2162 = dma.done.wait [#allocation9], 36864  }
  0x1a   :  { %2163 = vsyncadd [#allocation9], 4294930432 }
  0x1b   :  { %2164 = dma.done.wait [#allocation12], 16384  }
  0x1c   :  { %2165 = vsyncadd [#allocation12], 4294950912  ;;  %v2178_v0 = vmov 0   ;;  %v132_v1 = vld [vmem:[%s2653_s2 + $0x8] sm:$0xff]  ;;  %v131_v2 = vld [vmem:[%s2653_s2] sm:$0xff]  ;;  %vm307_vm0 = vcmask 523264  }
  0x1d   :  { %1925 = vset.pattern.permute.xlu1 %v2178_v0  ;;  %1924 = vset.pattern.permute.xlu0 %v2178_v0  ;;  %v303_v3 = vld [vmem:[#allocation8 + $0xe0] sm:$0xff]  ;;  %v305_v4 = vld [vmem:[#allocation8 + $0xf0] sm:$0xff]  ;;  %v304_v7 = vld [vmem:[#allocation8 + $0xe8] sm:$0xff]  ;;  %v153_v15 = vsub.f32 1.0, %v132_v1  ;;  %v152_v16 = vsub.f32 1.0, %v131_v2  ;;  %s1880_s19 = sshll.u32 %s2662_s11, 4  ;;  %s1881_s19 = int_to_ptr.hbm [resolvable:$true] %s1880_s19 }
  0x1e   :  { %145 = vperm.xlu1 %1925, %v132_v1   ;;  %140 = vperm.xlu0 %1924, %v131_v2   ;;  %v237_v5 = vld [vmem:[#allocation7 + $0x1e0] sm:$0xff]  ;;  %v301_v8 = vld [vmem:[#allocation8 + $0xd0] sm:$0xff]  ;;  %v300_v11 = vld [vmem:[#allocation8 + $0xc8] sm:$0xff] }
  0x1f   :  { %v299_v6 = vld [vmem:[#allocation8 + $0xc0] sm:$0xff]  ;;  %322 = vmatpush.msra.mxu3 %v303_v3  ;;  %368 = vmatpush.msra.mxu2 %v305_v4  ;;  %v297_v12 = vld [vmem:[#allocation8 + $0xb0] sm:$0xff]  ;;  %v296_v14 = vld [vmem:[#allocation8 + $0xa8] sm:$0xff] }
  0x20   :  { %v233_v9 = vld [vmem:[#allocation7 + $0x1c0] sm:$0xff]  ;;  %412 = vmatpush.msra.mxu0 %v237_v5  ;;  %345 = vmatpush.msra.mxu1 %v304_v7  ;;  %v293_v18 = vld [vmem:[#allocation8 + $0x90] sm:$0xff]  ;;  %v292_v21 = vld [vmem:[#allocation8 + $0x88] sm:$0xff] }
  0x21   :  { %v295_v10 = vld [vmem:[#allocation8 + $0xa0] sm:$0xff]  ;;  %323 = vmatpush.msra.mxu3 %v299_v6  ;;  %369 = vmatpush.msra.mxu2 %v301_v8  ;;  %v289_v22 = vld [vmem:[#allocation8 + $0x70] sm:$0xff]  ;;  %v288_v25 = vld [vmem:[#allocation8 + $0x68] sm:$0xff] }
  0x22   :  { %v229_v13 = vld [vmem:[#allocation7 + $0x1a0] sm:$0xff]  ;;  %413 = vmatpush.msra.mxu0 %v233_v9  ;;  %346 = vmatpush.msra.mxu1 %v300_v11  ;;  %v285_v26 = vld [vmem:[#allocation8 + $0x50] sm:$0xff]  ;;  %v284_v29 = vld [vmem:[#allocation8 + $0x48] sm:$0xff] }
  0x23   :  { %v291_v17 = vld [vmem:[#allocation8 + $0x80] sm:$0xff]  ;;  %324 = vmatpush.msra.mxu3 %v295_v10  ;;  %370 = vmatpush.msra.mxu2 %v297_v12  ;;  %v281_v30 = vld [vmem:[#allocation8 + $0x30] sm:$0xff]  ;;  %v280_v33 = vld [vmem:[#allocation8 + $0x28] sm:$0xff] }
  0x24   :  { %414 = vmatpush.msra.mxu0 %v229_v13  ;;  %347 = vmatpush.msra.mxu1 %v296_v14  ;;  %v225_v19 = vld [vmem:[#allocation7 + $0x180] sm:$0xff]  ;;  %v277_v35 = vld [vmem:[#allocation8 + $0x10] sm:$0xff]  ;;  %v276_v37 = vld [vmem:[#allocation8 + $0x8] sm:$0xff] }
  0x25   :  { %v287_v20 = vld [vmem:[#allocation8 + $0x60] sm:$0xff]  ;;  %325 = vmatpush.msra.mxu3 %v291_v17  ;;  %371 = vmatpush.msra.mxu2 %v293_v18  ;;  %v306_v38 = vld [vmem:[#allocation8 + $0xf8] sm:$0xff]  ;;  %v238_v39 = vld [vmem:[#allocation7 + $0x1e8] sm:$0xff] }
  0x26   :  { %161 = vperm.xlu1 %1925, %v153_v15   ;;  %156 = vperm.xlu0 %1924, %v152_v16   ;;  %v221_v23 = vld [vmem:[#allocation7 + $0x160] sm:$0xff]  ;;  %v302_v42 = vld [vmem:[#allocation8 + $0xd8] sm:$0xff]  ;;  %v234_v43 = vld [vmem:[#allocation7 + $0x1c8] sm:$0xff] }
  0x27   :  { %v283_v24 = vld [vmem:[#allocation8 + $0x40] sm:$0xff]  ;;  %415 = vmatpush.msra.mxu0 %v225_v19  ;;  %326 = vmatpush.msra.mxu3 %v287_v20  ;;  %v298_v46 = vld [vmem:[#allocation8 + $0xb8] sm:$0xff]  ;;  %v230_v47 = vld [vmem:[#allocation7 + $0x1a8] sm:$0xff] }
  0x28   :  { %348 = vmatpush.msra.mxu1 %v292_v21  ;;  %372 = vmatpush.msra.mxu2 %v289_v22  ;;  %v217_v27 = vld [vmem:[#allocation7 + $0x140] sm:$0xff]  ;;  %v294_v50 = vld [vmem:[#allocation8 + $0x98] sm:$0xff]  ;;  %v226_v51 = vld [vmem:[#allocation7 + $0x188] sm:$0xff] }
  0x29   :  { %v279_v28 = vld [vmem:[#allocation8 + $0x20] sm:$0xff]  ;;  %416 = vmatpush.msra.mxu0 %v221_v23  ;;  %327 = vmatpush.msra.mxu3 %v283_v24  ;;  %v290_v55 = vld [vmem:[#allocation8 + $0x78] sm:$0xff]  ;;  %v222_v56 = vld [vmem:[#allocation7 + $0x168] sm:$0xff] }
  0x2a   :  { %349 = vmatpush.msra.mxu1 %v288_v25  ;;  %373 = vmatpush.msra.mxu2 %v285_v26  ;;  %v213_v31 = vld [vmem:[#allocation7 + $0x120] sm:$0xff]  ;;  %v286_v59 = vld [vmem:[#allocation8 + $0x58] sm:$0xff]  ;;  %v218_v60 = vld [vmem:[#allocation7 + $0x148] sm:$0xff] }
  0x2b   :  { %v275_v32 = vld [vmem:[#allocation8] sm:$0xff]  ;;  %417 = vmatpush.msra.mxu0 %v217_v27  ;;  %328 = vmatpush.msra.mxu3 %v279_v28  ;;  %v282_v63 = vld [vmem:[#allocation8 + $0x38] sm:$0xff]  ;;  %v214_v0 = vld [vmem:[#allocation7 + $0x128] sm:$0xff] }
  0x2c   :  { %v2273_v34 = vld [vmem:[%s2652_s1] sm:$0xff]  ;;  %350 = vmatpush.msra.mxu1 %v284_v29  ;;  %374 = vmatpush.msra.mxu2 %v281_v30  ;;  %v2280_v52 = vld [vmem:[%s2652_s1 + $0x8] sm:$0xff]  ;;  %v239_v9 = vld [vmem:[#allocation7 + $0x1f0] sm:$0xff] }
  0x2d   :  { %v209_v36 = vld [vmem:[#allocation7 + $0x100] sm:$0xff]  ;;  %418 = vmatpush.msra.mxu0 %v213_v31  ;;  %329 = vmatpush.msra.mxu3 %v275_v32  ;;  %v278_v3 = vld [vmem:[#allocation8 + $0x18] sm:$0xff]  ;;  %v210_v4 = vld [vmem:[#allocation7 + $0x108] sm:$0xff] }
  0x2e   :  { %351 = vmatpush.msra.mxu1 %v280_v33  ;;  %1896 = vmatmul.msk.f32.vlgmr.msra.gmra.mxu3 %vm307_vm0, %v2273_v34  ;;  %v205_v40 = vld [vmem:[#allocation7 + $0xe0] sm:$0xff]  ;;  %v206_v7 = vld [vmem:[#allocation7 + $0xe8] sm:$0xff]  ;;  %v240_v10 = vld [vmem:[#allocation7 + $0x1f8] sm:$0xff] }
  0x2f   :  { %375 = vmatpush.msra.mxu2 %v277_v35  ;;  %419 = vmatpush.msra.mxu0 %v209_v36  ;;  %v269_v41 = vld [vmem:[#allocation7 + $0x2e0] sm:$0xff]  ;;  %v270_v8 = vld [vmem:[#allocation7 + $0x2e8] sm:$0xff]  ;;  %v235_v13 = vld [vmem:[#allocation7 + $0x1d0] sm:$0xff] }
  0x30   :  { %352 = vmatpush.msra.mxu1 %v276_v37  ;;  %391 = vmatpush.msrb.mxu3 %v306_v38  ;;  %v201_v44 = vld [vmem:[#allocation7 + $0xc0] sm:$0xff]  ;;  %v202_v11 = vld [vmem:[#allocation7 + $0xc8] sm:$0xff]  ;;  %v236_v14 = vld [vmem:[#allocation7 + $0x1d8] sm:$0xff] }
  0x31   :  { %458 = vmatpush.msrb.mxu2 %v238_v39  ;;  %420 = vmatpush.msra.mxu0 %v205_v40  ;;  %v265_v45 = vld [vmem:[#allocation7 + $0x2c0] sm:$0xff]  ;;  %v266_v12 = vld [vmem:[#allocation7 + $0x2c8] sm:$0xff]  ;;  %v231_v17 = vld [vmem:[#allocation7 + $0x1b0] sm:$0xff] }
  0x32   :  { %443 = vmatpush.msrb.mxu1 %v269_v41  ;;  %392 = vmatpush.msrb.mxu3 %v302_v42  ;;  %v197_v48 = vld [vmem:[#allocation7 + $0xa0] sm:$0xff]  ;;  %v198_v15 = vld [vmem:[#allocation7 + $0xa8] sm:$0xff]  ;;  %v232_v18 = vld [vmem:[#allocation7 + $0x1b8] sm:$0xff] }
  0x33   :  { %459 = vmatpush.msrb.mxu2 %v234_v43  ;;  %421 = vmatpush.msra.mxu0 %v201_v44  ;;  %v261_v49 = vld [vmem:[#allocation7 + $0x2a0] sm:$0xff]  ;;  %v262_v16 = vld [vmem:[#allocation7 + $0x2a8] sm:$0xff]  ;;  %v227_v21 = vld [vmem:[#allocation7 + $0x190] sm:$0xff] }
  0x34   :  { %444 = vmatpush.msrb.mxu1 %v265_v45  ;;  %393 = vmatpush.msrb.mxu3 %v298_v46  ;;  %v193_v53 = vld [vmem:[#allocation7 + $0x80] sm:$0xff]  ;;  %v194_v19 = vld [vmem:[#allocation7 + $0x88] sm:$0xff]  ;;  %v228_v22 = vld [vmem:[#allocation7 + $0x198] sm:$0xff] }
  0x35   :  { %460 = vmatpush.msrb.mxu2 %v230_v47  ;;  %422 = vmatpush.msra.mxu0 %v197_v48  ;;  %v257_v54 = vld [vmem:[#allocation7 + $0x280] sm:$0xff]  ;;  %v258_v20 = vld [vmem:[#allocation7 + $0x288] sm:$0xff]  ;;  %v223_v25 = vld [vmem:[#allocation7 + $0x170] sm:$0xff] }
  0x36   :  { %445 = vmatpush.msrb.mxu1 %v261_v49  ;;  %394 = vmatpush.msrb.mxu3 %v294_v50  ;;  %v189_v57 = vld [vmem:[#allocation7 + $0x60] sm:$0xff]  ;;  %v190_v23 = vld [vmem:[#allocation7 + $0x68] sm:$0xff]  ;;  %v224_v26 = vld [vmem:[#allocation7 + $0x178] sm:$0xff] }
  0x37   :  { %461 = vmatpush.msrb.mxu2 %v226_v51  ;;  %1897 = vmatmul.msk.f32.gmra.mxu3 %vm307_vm0, %v2280_v52  ;;  %v253_v58 = vld [vmem:[#allocation7 + $0x260] sm:$0xff]  ;;  %v254_v24 = vld [vmem:[#allocation7 + $0x268] sm:$0xff]  ;;  %v219_v29 = vld [vmem:[#allocation7 + $0x150] sm:$0xff] }
  0x38   :  { %423 = vmatpush.msra.mxu0 %v193_v53  ;;  %446 = vmatpush.msrb.mxu1 %v257_v54  ;;  %v185_v61 = vld [vmem:[#allocation7 + $0x40] sm:$0xff]  ;;  %v186_v27 = vld [vmem:[#allocation7 + $0x48] sm:$0xff]  ;;  %v220_v30 = vld [vmem:[#allocation7 + $0x158] sm:$0xff] }
  0x39   :  { %395 = vmatpush.msrb.mxu3 %v290_v55  ;;  %462 = vmatpush.msrb.mxu2 %v222_v56  ;;  %v249_v62 = vld [vmem:[#allocation7 + $0x240] sm:$0xff]  ;;  %v250_v28 = vld [vmem:[#allocation7 + $0x248] sm:$0xff]  ;;  %v215_v33 = vld [vmem:[#allocation7 + $0x130] sm:$0xff] }
  0x3a   :  { %424 = vmatpush.msra.mxu0 %v189_v57  ;;  %447 = vmatpush.msrb.mxu1 %v253_v58  ;;  %v181_v1 = vld [vmem:[#allocation7 + $0x20] sm:$0xff]  ;;  %v182_v31 = vld [vmem:[#allocation7 + $0x28] sm:$0xff]  ;;  %v211_v37 = vld [vmem:[#allocation7 + $0x110] sm:$0xff] }
  0x3b   :  { %396 = vmatpush.msrb.mxu3 %v286_v59  ;;  %463 = vmatpush.msrb.mxu2 %v218_v60  ;;  %v245_v2 = vld [vmem:[#allocation7 + $0x220] sm:$0xff]  ;;  %v246_v32 = vld [vmem:[#allocation7 + $0x228] sm:$0xff]  ;;  %v212_v38 = vld [vmem:[#allocation7 + $0x118] sm:$0xff] }
  0x3c   :  { %425 = vmatpush.msra.mxu0 %v185_v61  ;;  %448 = vmatpush.msrb.mxu1 %v249_v62  ;;  %v177_v5 = vld [vmem:[#allocation7] sm:$0xff]  ;;  %v178_v35 = vld [vmem:[#allocation7 + $0x8] sm:$0xff]  ;;  %v207_v39 = vld [vmem:[#allocation7 + $0xf0] sm:$0xff] }
  0x3d   :  { %397 = vmatpush.msrb.mxu3 %v282_v63  ;;  %464 = vmatpush.msrb.mxu2 %v214_v0  ;;  %v241_v6 = vld [vmem:[#allocation7 + $0x200] sm:$0xff]  ;;  %v242_v36 = vld [vmem:[#allocation7 + $0x208] sm:$0xff]  ;;  %v271_v40 = vld [vmem:[#allocation7 + $0x2f0] sm:$0xff] }
  0x3e   :  { %426 = vmatpush.msra.mxu0 %v181_v1  ;;  %449 = vmatpush.msrb.mxu1 %v245_v2  ;;  %v208_v41 = vld [vmem:[#allocation7 + $0xf8] sm:$0xff]  ;;  %v203_v43 = vld [vmem:[#allocation7 + $0xd0] sm:$0xff] }
  0x3f   :  { %398 = vmatpush.msrb.mxu3 %v278_v3  ;;  %465 = vmatpush.msrb.mxu2 %v210_v4  ;;  %v272_v42 = vld [vmem:[#allocation7 + $0x2f8] sm:$0xff]  ;;  %v267_v44 = vld [vmem:[#allocation7 + $0x2d0] sm:$0xff] }
  0x40   :  { %1898 = vmatmul.msk.f32.vlgmr.msra.gmra.mxu1 %vm307_vm0, %v2273_v34  ;;  %1900 = vmatmul.msk.f32.vlgmr.msra.gmra.mxu2 %vm307_vm0, %v2273_v34  ;;  %v204_v45 = vld [vmem:[#allocation7 + $0xd8] sm:$0xff]  ;;  %v199_v47 = vld [vmem:[#allocation7 + $0xb0] sm:$0xff] }
  0x41   :  { %1902 = vmatmul.msk.f32.vlgmr.msrb.gmra.mxu3 %vm307_vm0, %v2273_v34  ;;  %427 = vmatpush.msra.mxu0 %v177_v5  ;;  %v216_v34 = vld [vmem:[#allocation7 + $0x138] sm:$0xff]  ;;  %v263_v48 = vld [vmem:[#allocation7 + $0x2b0] sm:$0xff] }
  0x42   :  { %450 = vmatpush.msrb.mxu1 %v241_v6  ;;  %466 = vmatpush.msrb.mxu2 %v206_v7  ;;  %v268_v46 = vld [vmem:[#allocation7 + $0x2d8] sm:$0xff]  ;;  %v195_v51 = vld [vmem:[#allocation7 + $0x90] sm:$0xff] }
  0x43   :  { %489 = vmatpush.msra.mxu3 %v270_v8  ;;  %550 = vmatpush.msrb.mxu0 %v240_v10  ;;  %v200_v49 = vld [vmem:[#allocation7 + $0xb8] sm:$0xff]  ;;  %v191_v55 = vld [vmem:[#allocation7 + $0x70] sm:$0xff] }
  0x44   :  { %504 = vmatpush.msra.mxu1 %v239_v9  ;;  %467 = vmatpush.msrb.mxu2 %v202_v11  ;;  %v264_v50 = vld [vmem:[#allocation7 + $0x2b8] sm:$0xff]  ;;  %v255_v56 = vld [vmem:[#allocation7 + $0x270] sm:$0xff] }
  0x45   :  { %490 = vmatpush.msra.mxu3 %v266_v12  ;;  %551 = vmatpush.msrb.mxu0 %v236_v14  ;;  %v196_v53 = vld [vmem:[#allocation7 + $0x98] sm:$0xff]  ;;  %v187_v59 = vld [vmem:[#allocation7 + $0x50] sm:$0xff] }
  0x46   :  { %505 = vmatpush.msra.mxu1 %v235_v13  ;;  %468 = vmatpush.msrb.mxu2 %v198_v15  ;;  %v260_v54 = vld [vmem:[#allocation7 + $0x298] sm:$0xff]  ;;  %v251_v60 = vld [vmem:[#allocation7 + $0x250] sm:$0xff]  ;;  %v134_v13 = vld [vmem:[#allocation2 + $0x8] sm:$0xff] }
  0x47   :  { %491 = vmatpush.msra.mxu3 %v262_v16  ;;  %552 = vmatpush.msrb.mxu0 %v232_v18  ;;  %v192_v57 = vld [vmem:[#allocation7 + $0x78] sm:$0xff]  ;;  %v183_v63 = vld [vmem:[#allocation7 + $0x30] sm:$0xff] }
  0x48   :  { %1899 = vmatmul.msk.f32.gmra.mxu1 %vm307_vm0, %v2280_v52  ;;  %1901 = vmatmul.msk.f32.gmra.mxu2 %vm307_vm0, %v2280_v52  ;;  %v256_v58 = vld [vmem:[#allocation7 + $0x278] sm:$0xff]  ;;  %v247_v0 = vld [vmem:[#allocation7 + $0x230] sm:$0xff] }
  0x49   :  { %1903 = vmatmul.msk.f32.gmra.mxu3 %vm307_vm0, %v2280_v52  ;;  %506 = vmatpush.msra.mxu1 %v231_v17  ;;  %v259_v52 = vld [vmem:[#allocation7 + $0x290] sm:$0xff]  ;;  %v188_v61 = vld [vmem:[#allocation7 + $0x58] sm:$0xff] }
  0x4a   :  { %469 = vmatpush.msrb.mxu2 %v194_v19  ;;  %492 = vmatpush.msra.mxu3 %v258_v20  ;;  %v252_v62 = vld [vmem:[#allocation7 + $0x258] sm:$0xff]  ;;  %v179_v3 = vld [vmem:[#allocation7 + $0x10] sm:$0xff] }
  0x4b   :  { %507 = vmatpush.msra.mxu1 %v227_v21  ;;  %553 = vmatpush.msrb.mxu0 %v228_v22  ;;  %v184_v1 = vld [vmem:[#allocation7 + $0x38] sm:$0xff]  ;;  %v243_v4 = vld [vmem:[#allocation7 + $0x210] sm:$0xff] }
  0x4c   :  { %470 = vmatpush.msrb.mxu2 %v190_v23  ;;  %493 = vmatpush.msra.mxu3 %v254_v24  ;;  %v248_v2 = vld [vmem:[#allocation7 + $0x238] sm:$0xff]  ;;  %v135_v19 = vld [vmem:[#allocation2 + $0x10] sm:$0xff]  ;;  %v826_v24 = vld [vmem:[#allocation10 + $0x1e0] sm:$0xff] }
  0x4d   :  { %508 = vmatpush.msra.mxu1 %v223_v25  ;;  %554 = vmatpush.msrb.mxu0 %v224_v26  ;;  %v180_v5 = vld [vmem:[#allocation7 + $0x18] sm:$0xff]  ;;  %v890_v25 = vld [vmem:[#allocation10 + $0x3e0] sm:$0xff] }
  0x4e   :  { %471 = vmatpush.msrb.mxu2 %v186_v27  ;;  %494 = vmatpush.msra.mxu3 %v250_v28  ;;  %v244_v6 = vld [vmem:[#allocation7 + $0x218] sm:$0xff]  ;;  %v822_v27 = vld [vmem:[#allocation10 + $0x1c0] sm:$0xff] }
  0x4f   :  { %509 = vmatpush.msra.mxu1 %v219_v29  ;;  %555 = vmatpush.msrb.mxu0 %v220_v30  ;;  %v137_v9 = vld [vmem:[#allocation5] sm:$0x3]  ;;  %v136_v22 = vld [vmem:[#allocation2 + $0x18] sm:$0xff]  ;;  %v886_v28 = vld [vmem:[#allocation10 + $0x3c0] sm:$0xff] }
  0x50   :  { %472 = vmatpush.msrb.mxu2 %v182_v31  ;;  %495 = vmatpush.msra.mxu3 %v246_v32  ;;  %v165_v10 = vperm.slane %v137_v9, 0  ;;  %v166_v11 = vperm.slane %v137_v9, 1  ;;  %v133_v12 = vld [vmem:[#allocation2] sm:$0xff]  ;;  %v827_v9 = vld [vmem:[#allocation10 + $0x1e8] sm:$0xff] }
  0x51   :  { %510 = vmatpush.msra.mxu1 %v215_v33  ;;  %556 = vmatpush.msrb.mxu0 %v216_v34  ;;  %v818_v32 = vld [vmem:[#allocation10 + $0x1a0] sm:$0xff] }
  0x52   :  { %473 = vmatpush.msrb.mxu2 %v178_v35  ;;  %496 = vmatpush.msra.mxu3 %v242_v36  ;;  %v882_v33 = vld [vmem:[#allocation10 + $0x3a0] sm:$0xff] }
  0x53   :  { %511 = vmatpush.msra.mxu1 %v211_v37  ;;  %557 = vmatpush.msrb.mxu0 %v212_v38  ;;  %v814_v36 = vld [vmem:[#allocation10 + $0x180] sm:$0xff] }
  0x54   :  { %535 = vmatpush.msrb.mxu3 %v271_v40  ;;  %581 = vmatpush.msra.mxu2 %v272_v42  ;;  %v878_v37 = vld [vmem:[#allocation10 + $0x380] sm:$0xff] }
  0x55   :  { %512 = vmatpush.msra.mxu1 %v207_v39  ;;  %558 = vmatpush.msrb.mxu0 %v208_v41  ;;  %v810_v38 = vld [vmem:[#allocation10 + $0x160] sm:$0xff] }
  0x56   :  { %536 = vmatpush.msrb.mxu3 %v267_v44  ;;  %582 = vmatpush.msra.mxu2 %v268_v46  ;;  %v874_v39 = vld [vmem:[#allocation10 + $0x360] sm:$0xff] }
  0x57   :  { %513 = vmatpush.msra.mxu1 %v203_v43  ;;  %559 = vmatpush.msrb.mxu0 %v204_v45  ;;  %v954_v40 = vld [vmem:[#allocation10 + $0x5e0] sm:$0xff] }
  0x58   :  { %537 = vmatpush.msrb.mxu3 %v263_v48  ;;  %583 = vmatpush.msra.mxu2 %v264_v50  ;;  %v1018_v41 = vld [vmem:[#allocation10 + $0x7e0] sm:$0xff] }
  0x59   :  { %514 = vmatpush.msra.mxu1 %v199_v47  ;;  %560 = vmatpush.msrb.mxu0 %v200_v49  ;;  %v806_v42 = vld [vmem:[#allocation10 + $0x140] sm:$0xff] }
  0x5a   :  { %538 = vmatpush.msrb.mxu3 %v259_v52  ;;  %584 = vmatpush.msra.mxu2 %v260_v54  ;;  %v870_v43 = vld [vmem:[#allocation10 + $0x340] sm:$0xff] }
  0x5b   :  { %515 = vmatpush.msra.mxu1 %v195_v51  ;;  %561 = vmatpush.msrb.mxu0 %v196_v53  ;;  %v802_v44 = vld [vmem:[#allocation10 + $0x120] sm:$0xff] }
  0x5c   :  { %539 = vmatpush.msrb.mxu3 %v255_v56  ;;  %585 = vmatpush.msra.mxu2 %v256_v58  ;;  %v866_v45 = vld [vmem:[#allocation10 + $0x320] sm:$0xff] }
  0x5d   :  { %516 = vmatpush.msra.mxu1 %v191_v55  ;;  %562 = vmatpush.msrb.mxu0 %v192_v57  ;;  %v950_v46 = vld [vmem:[#allocation10 + $0x5c0] sm:$0xff] }
  0x5e   :  { %540 = vmatpush.msrb.mxu3 %v251_v60  ;;  %586 = vmatpush.msra.mxu2 %v252_v62  ;;  %v1014_v47 = vld [vmem:[#allocation10 + $0x7c0] sm:$0xff] }
  0x5f   :  { %517 = vmatpush.msra.mxu1 %v187_v59  ;;  %563 = vmatpush.msrb.mxu0 %v188_v61  ;;  %v798_v48 = vld [vmem:[#allocation10 + $0x100] sm:$0xff] }
  0x60   :  { %541 = vmatpush.msrb.mxu3 %v247_v0  ;;  %587 = vmatpush.msra.mxu2 %v248_v2  ;;  %v862_v49 = vld [vmem:[#allocation10 + $0x300] sm:$0xff] }
  0x61   :  { %518 = vmatpush.msra.mxu1 %v183_v63  ;;  %564 = vmatpush.msrb.mxu0 %v184_v1  ;;  %v794_v50 = vld [vmem:[#allocation10 + $0xe0] sm:$0xff] }
  0x62   :  { %542 = vmatpush.msrb.mxu3 %v243_v4  ;;  %588 = vmatpush.msra.mxu2 %v244_v6  ;;  %v858_v51 = vld [vmem:[#allocation10 + $0x2e0] sm:$0xff] }
  0x63   :  { %519 = vmatpush.msra.mxu1 %v179_v3  ;;  %565 = vmatpush.msrb.mxu0 %v180_v5  ;;  %v790_v52 = vld [vmem:[#allocation10 + $0xc0] sm:$0xff] }
  0x64   :  { %v786_v53 = vld [vmem:[#allocation10 + $0xa0] sm:$0xff] }
  0x65   :  { %v782_v54 = vld [vmem:[#allocation10 + $0x80] sm:$0xff] }
  0x66   :  { %v778_v56 = vld [vmem:[#allocation10 + $0x60] sm:$0xff] }
  0x67   :  { %v854_v57 = vld [vmem:[#allocation10 + $0x2c0] sm:$0xff] }
  0x68   :  { %v946_v58 = vld [vmem:[#allocation10 + $0x5a0] sm:$0xff] }
  0x69   :  { %v1010_v59 = vld [vmem:[#allocation10 + $0x7a0] sm:$0xff] }
  0x6a   :  { %v774_v60 = vld [vmem:[#allocation10 + $0x40] sm:$0xff] }
  0x6b   :  { %v850_v61 = vld [vmem:[#allocation10 + $0x2a0] sm:$0xff] }
  0x6c   :  { %v942_v62 = vld [vmem:[#allocation10 + $0x580] sm:$0xff] }
  0x6d   :  { %v1006_v63 = vld [vmem:[#allocation10 + $0x780] sm:$0xff] }
  0x6e   :  { %v770_v0 = vld [vmem:[#allocation10 + $0x20] sm:$0xff] }
  0x6f   :  { %v846_v1 = vld [vmem:[#allocation10 + $0x280] sm:$0xff] }
  0x70   :  { %v938_v2 = vld [vmem:[#allocation10 + $0x560] sm:$0xff] }
  0x71   :  { %v1002_v3 = vld [vmem:[#allocation10 + $0x760] sm:$0xff] }
  0x72   :  { %v766_v4 = vld [vmem:[#allocation10] sm:$0xff] }
  0x73   :  { %v842_v5 = vld [vmem:[#allocation10 + $0x260] sm:$0xff] }
  0x74   :  { %v934_v6 = vld [vmem:[#allocation10 + $0x540] sm:$0xff] }
  0x90   :  { %v141_v7 = vpop.permute.xlu0 %140  ;;  %v146_v8 = vpop.permute.xlu1 %145 }
  0x91   :  { %v148_v15 = vmul.f32 %v141_v7, %v133_v12  ;;  %v149_v16 = vmul.f32 %v141_v7, %v134_v13  ;;  %v150_v26 = vmul.f32 %v146_v8, %v135_v19  ;;  %v151_v29 = vmul.f32 %v146_v8, %v136_v22  ;;  %v998_v8 = vld [vmem:[#allocation10 + $0x740] sm:$0xff]  ;;  %v823_v13 = vld [vmem:[#allocation10 + $0x1c8] sm:$0xff] }
  0x92   :  { %v994_v12 = vld [vmem:[#allocation10 + $0x720] sm:$0xff]  ;;  %v815_v22 = vld [vmem:[#allocation10 + $0x188] sm:$0xff] }
  0x93   :  { %v830_v19 = vld [vmem:[#allocation10 + $0x200] sm:$0xff] }
  0x98   :  { %v157_v14 = vpop.permute.xlu0 %156  ;;  %v162_v23 = vpop.permute.xlu1 %161 }
  0x99   :  { %v169_v17 = vmul.f32 %v165_v10, %v157_v14  ;;  %v170_v18 = vmul.f32 %v166_v11, %v157_v14  ;;  %v171_v30 = vmul.f32 %v165_v10, %v162_v23  ;;  %v172_v31 = vmul.f32 %v166_v11, %v162_v23  ;;  %v838_v10 = vld [vmem:[#allocation10 + $0x240] sm:$0xff]  ;;  %v891_v23 = vld [vmem:[#allocation10 + $0x3e8] sm:$0xff] }
  0x9a   :  { %v930_v11 = vld [vmem:[#allocation10 + $0x520] sm:$0xff] }
  0x9b   :  { %v173_v20 = vadd.f32 %v169_v17, %v148_v15  ;;  %v174_v21 = vadd.f32 %v170_v18, %v149_v16  ;;  %v175_v34 = vadd.f32 %v171_v30, %v150_v26  ;;  %v176_v35 = vadd.f32 %v172_v31, %v151_v29  ;;  %v834_v15 = vld [vmem:[#allocation10 + $0x220] sm:$0xff]  ;;  %v819_v18 = vld [vmem:[#allocation10 + $0x1a8] sm:$0xff] }
  0x9c   :  { %v926_v16 = vld [vmem:[#allocation10 + $0x500] sm:$0xff]  ;;  %v887_v29 = vld [vmem:[#allocation10 + $0x3c8] sm:$0xff] }
  0x9d   :  { %428 = vmatmul.f32.vlgmr.msra.gmra.mxu0 %v173_v20  ;;  %1904 = vmatmul.msk.f32.vlgmr.msrb.gmra.mxu1 %vm307_vm0, %v174_v21  ;;  %v990_v17 = vld [vmem:[#allocation10 + $0x700] sm:$0xff] }
  0x9e   :  { %474 = vmatmul.f32.vlgmr.msrb.gmra.mxu2 %v173_v20  ;;  %1906 = vmatmul.msk.f32.vlgmr.msra.gmra.mxu3 %vm307_vm0, %v174_v21  ;;  %v918_v26 = vld [vmem:[#allocation10 + $0x4c0] sm:$0xff] }
  0x9f   :  { %1032 = vmatpush.msra.mxu3 %v826_v24  ;;  %1055 = vmatpush.msrb.mxu1 %v890_v25  ;;  %v914_v30 = vld [vmem:[#allocation10 + $0x4a0] sm:$0xff] }
  0xa0   :  { %1078 = vmatpush.msrb.mxu2 %v954_v40  ;;  %1101 = vmatpush.msra.mxu0 %v1018_v41  ;;  %v978_v31 = vld [vmem:[#allocation10 + $0x6a0] sm:$0xff]  ;;  %v799_v41 = vld [vmem:[#allocation10 + $0x108] sm:$0xff] }
  0xa1   :  { %1033 = vmatpush.msra.mxu3 %v822_v27  ;;  %1056 = vmatpush.msrb.mxu1 %v886_v28  ;;  %v982_v27 = vld [vmem:[#allocation10 + $0x6c0] sm:$0xff]  ;;  %v811_v28 = vld [vmem:[#allocation10 + $0x168] sm:$0xff] }
  0xa2   :  { %1079 = vmatpush.msrb.mxu2 %v950_v46  ;;  %1102 = vmatpush.msra.mxu0 %v1014_v47  ;;  %v970_v40 = vld [vmem:[#allocation10 + $0x660] sm:$0xff] }
  0xa3   :  { %1034 = vmatpush.msra.mxu3 %v818_v32  ;;  %1057 = vmatpush.msrb.mxu1 %v882_v33  ;;  %v807_v33 = vld [vmem:[#allocation10 + $0x148] sm:$0xff]  ;;  %v966_v46 = vld [vmem:[#allocation10 + $0x640] sm:$0xff] }
  0xa4   :  { %1080 = vmatpush.msrb.mxu2 %v946_v58  ;;  %1103 = vmatpush.msra.mxu0 %v1010_v59  ;;  %v2323_v47 = vld [vmem:[%s2657_s6] sm:$0xf] }
  0xa5   :  { %431 = vmatmul.f32.gmra.mxu0 %v175_v34  ;;  %1905 = vmatmul.msk.f32.gmra.mxu1 %vm307_vm0, %v176_v35  ;;  %v598_v58 = vperm.slane %v2323_v47, 0  ;;  %v894_v59 = vld [vmem:[#allocation10 + $0x400] sm:$0xff] }
  0xa6   :  { %477 = vmatmul.f32.gmra.mxu2 %v175_v34  ;;  %1907 = vmatmul.msk.f32.gmra.mxu3 %vm307_vm0, %v176_v35 }
  0xa7   :  { %1035 = vmatpush.msra.mxu3 %v814_v36  ;;  %1058 = vmatpush.msrb.mxu1 %v878_v37  ;;  %v974_v36 = vld [vmem:[#allocation10 + $0x680] sm:$0xff]  ;;  %v803_v37 = vld [vmem:[#allocation10 + $0x128] sm:$0xff] }
  0xa8   :  { %1081 = vmatpush.msrb.mxu2 %v942_v62  ;;  %1104 = vmatpush.msra.mxu0 %v1006_v63  ;;  %v863_v62 = vld [vmem:[#allocation10 + $0x308] sm:$0xff] }
  0xa9   :  { %1036 = vmatpush.msra.mxu3 %v810_v38  ;;  %1059 = vmatpush.msrb.mxu1 %v874_v39  ;;  %v879_v38 = vld [vmem:[#allocation10 + $0x388] sm:$0xff]  ;;  %v906_v39 = vld [vmem:[#allocation10 + $0x460] sm:$0xff] }
  0xaa   :  { %1082 = vmatpush.msrb.mxu2 %v938_v2  ;;  %1105 = vmatpush.msra.mxu0 %v1002_v3  ;;  %v955_v63 = vld [vmem:[#allocation10 + $0x5e8] sm:$0xff] }
  0xab   :  { %1037 = vmatpush.msra.mxu3 %v806_v42  ;;  %1060 = vmatpush.msrb.mxu1 %v870_v43  ;;  %v875_v42 = vld [vmem:[#allocation10 + $0x368] sm:$0xff] }
  0xac   :  { %1083 = vmatpush.msrb.mxu2 %v934_v6  ;;  %1106 = vmatpush.msra.mxu0 %v998_v8  ;;  %v859_v3 = vld [vmem:[#allocation10 + $0x2e8] sm:$0xff] }
  0xad   :  { %520 = vmatmul.f32.vlgmr.msra.gmra.mxu1 %v173_v20  ;;  %566 = vmatmul.f32.vlgmr.msrb.gmra.mxu0 %v173_v20  ;;  %v922_v20 = vld [vmem:[#allocation10 + $0x4e0] sm:$0xff] }
  0xae   :  { %1908 = vmatmul.msk.f32.vlgmr.msrb.gmra.mxu3 %vm307_vm0, %v174_v21  ;;  %1910 = vmatmul.msk.f32.vlgmr.msra.gmra.mxu2 %vm307_vm0, %v174_v21  ;;  %v986_v21 = vld [vmem:[#allocation10 + $0x6e0] sm:$0xff] }
  0xaf   :  { %1038 = vmatpush.msra.mxu3 %v802_v44  ;;  %1061 = vmatpush.msrb.mxu1 %v866_v45  ;;  %v902_v45 = vld [vmem:[#allocation10 + $0x440] sm:$0xff] }
  0xb0   :  { %1084 = vmatpush.msrb.mxu2 %v930_v11  ;;  %1107 = vmatpush.msra.mxu0 %v994_v12  ;;  %v599_v11 = vperm.slane %v2323_v47, 1 }
  0xb1   :  { %1039 = vmatpush.msra.mxu3 %v798_v48  ;;  %1062 = vmatpush.msrb.mxu1 %v862_v49  ;;  %v2304_v55 = vpop.f32.mrf.mxu3  ;;  %v795_v48 = vld [vmem:[#allocation10 + $0xe8] sm:$0xff] }
  0xb2   :  { %1085 = vmatpush.msrb.mxu2 %v926_v16  ;;  %1108 = vmatpush.msra.mxu0 %v990_v17  ;;  %v871_v49 = vld [vmem:[#allocation10 + $0x348] sm:$0xff] }
  0xb3   :  { %1040 = vmatpush.msra.mxu3 %v794_v50  ;;  %1063 = vmatpush.msrb.mxu1 %v858_v51  ;;  %v898_v50 = vld [vmem:[#allocation10 + $0x420] sm:$0xff]  ;;  %v855_v16 = vld [vmem:[#allocation10 + $0x2c8] sm:$0xff] }
  0xb4   :  { %1086 = vmatpush.msrb.mxu2 %v922_v20  ;;  %1109 = vmatpush.msra.mxu0 %v986_v21  ;;  %v962_v51 = vld [vmem:[#allocation10 + $0x620] sm:$0xff]  ;;  %v947_v17 = vld [vmem:[#allocation10 + $0x5a8] sm:$0xff] }
  0xb5   :  { %523 = vmatmul.f32.gmra.mxu1 %v175_v34  ;;  %569 = vmatmul.f32.gmra.mxu0 %v175_v34  ;;  %v883_v34 = vld [vmem:[#allocation10 + $0x3a8] sm:$0xff] }
  0xb6   :  { %1909 = vmatmul.msk.f32.gmra.mxu3 %vm307_vm0, %v176_v35  ;;  %1911 = vmatmul.msk.f32.gmra.mxu2 %vm307_vm0, %v176_v35  ;;  %v910_v35 = vld [vmem:[#allocation10 + $0x480] sm:$0xff]  ;;  %v1011_v20 = vld [vmem:[#allocation10 + $0x7a8] sm:$0xff] }
  0xb7   :  { %1041 = vmatpush.msra.mxu3 %v790_v52  ;;  %1064 = vmatpush.msrb.mxu1 %v854_v57 }
  0xb8   :  { %1087 = vmatpush.msrb.mxu2 %v918_v26  ;;  %1110 = vmatpush.msra.mxu0 %v982_v27  ;;  %v1007_v27 = vld [vmem:[#allocation10 + $0x788] sm:$0xff] }
  0xb9   :  { %1042 = vmatpush.msra.mxu3 %v786_v53  ;;  %1065 = vmatpush.msrb.mxu1 %v850_v61  ;;  %v787_v61 = vld [vmem:[#allocation10 + $0xa8] sm:$0xff] }
  0xba   :  { %v2306_v7 = vpop.f32.mrf.mxu3  ;;  %1088 = vmatpush.msrb.mxu2 %v914_v30  ;;  %1111 = vmatpush.msra.mxu0 %v978_v31  ;;  %v939_v30 = vld [vmem:[#allocation10 + $0x568] sm:$0xff] }
  0xbb   :  { %1043 = vmatpush.msra.mxu3 %v782_v54  ;;  %1066 = vmatpush.msrb.mxu1 %v846_v1  ;;  %v791_v54 = vld [vmem:[#allocation10 + $0xc8] sm:$0xff] }
  0xbc   :  { %1089 = vmatpush.msrb.mxu2 %v910_v35  ;;  %1112 = vmatpush.msra.mxu0 %v974_v36  ;;  %v1019_v1 = vld [vmem:[#allocation10 + $0x7e8] sm:$0xff] }
  0xbd   :  { %1044 = vmatpush.msra.mxu3 %v778_v56  ;;  %1067 = vmatpush.msrb.mxu1 %v842_v5  ;;  %v2308_v14 = vpop.f32.mrf.mxu1  ;;  %v867_v56 = vld [vmem:[#allocation10 + $0x328] sm:$0xff] }
  0xbe   :  { %1090 = vmatpush.msrb.mxu2 %v906_v39  ;;  %1113 = vmatpush.msra.mxu0 %v970_v40  ;;  %v767_v35 = vld [vmem:[#allocation10 + $0x8] sm:$0xff] }
  0xbf   :  { %1045 = vmatpush.msra.mxu3 %v774_v60  ;;  %1068 = vmatpush.msrb.mxu1 %v838_v10  ;;  %v958_v60 = vld [vmem:[#allocation10 + $0x600] sm:$0xff]  ;;  %v843_v36 = vld [vmem:[#allocation10 + $0x268] sm:$0xff] }
  0xc0   :  { %1091 = vmatpush.msrb.mxu2 %v902_v45  ;;  %1114 = vmatpush.msra.mxu0 %v966_v46  ;;  %v839_v46 = vld [vmem:[#allocation10 + $0x248] sm:$0xff] }
  0xc1   :  { %1046 = vmatpush.msra.mxu3 %v770_v0  ;;  %1069 = vmatpush.msrb.mxu1 %v834_v15  ;;  %v779_v15 = vld [vmem:[#allocation10 + $0x68] sm:$0xff] }
  0xc2   :  { %1092 = vmatpush.msrb.mxu2 %v898_v50  ;;  %1115 = vmatpush.msra.mxu0 %v962_v51 }
  0xc3   :  { %1047 = vmatpush.msra.mxu3 %v766_v4  ;;  %1070 = vmatpush.msrb.mxu1 %v830_v19  ;;  %v2310_v24 = vpop.f32.mrf.mxu2  ;;  %v951_v4 = vld [vmem:[#allocation10 + $0x5c8] sm:$0xff] }
  0xc4   :  { %v2312_v25 = vpop.f32.mrf.mxu3  ;;  %1093 = vmatpush.msrb.mxu2 %v894_v59  ;;  %1116 = vmatpush.msra.mxu0 %v958_v60  ;;  %v991_v59 = vld [vmem:[#allocation10 + $0x708] sm:$0xff] }
  0xc5   :  { %1124 = vmatpush.msrb.mxu3 %v827_v9  ;;  %1147 = vmatpush.msra.mxu1 %v891_v23  ;;  %v2314_v32 = vpop.f32.mrf.mxu1  ;;  %v1015_v9 = vld [vmem:[#allocation10 + $0x7c8] sm:$0xff] }
  0xc6   :  { %1170 = vmatpush.msra.mxu2 %v955_v63  ;;  %1193 = vmatpush.msrb.mxu0 %v1019_v1  ;;  %v943_v23 = vld [vmem:[#allocation10 + $0x588] sm:$0xff]  ;;  %v600_v1 = vperm.slane %v2323_v47, 2 }
  0xc7   :  { %1125 = vmatpush.msrb.mxu3 %v823_v13  ;;  %1148 = vmatpush.msra.mxu1 %v887_v29  ;;  %v847_v29 = vld [vmem:[#allocation10 + $0x288] sm:$0xff] }
  0xc8   :  { %1171 = vmatpush.msra.mxu2 %v951_v4  ;;  %1194 = vmatpush.msrb.mxu0 %v1015_v9  ;;  %v923_v60 = vld [vmem:[#allocation10 + $0x4e8] sm:$0xff] }
  0xc9   :  { %1126 = vmatpush.msrb.mxu3 %v819_v18  ;;  %1149 = vmatpush.msra.mxu1 %v883_v34  ;;  %v983_v4 = vld [vmem:[#allocation10 + $0x6c8] sm:$0xff] }
  0xca   :  { %1172 = vmatpush.msra.mxu2 %v947_v17  ;;  %1195 = vmatpush.msrb.mxu0 %v1011_v20  ;;  %v911_v20 = vld [vmem:[#allocation10 + $0x488] sm:$0xff] }
  0xcb   :  { %1127 = vmatpush.msrb.mxu3 %v815_v22  ;;  %1150 = vmatpush.msra.mxu1 %v879_v38  ;;  %v2316_v43 = vpop.f32.mrf.mxu2  ;;  %v775_v22 = vld [vmem:[#allocation10 + $0x48] sm:$0xff] }
  0xcc   :  { %v2318_v44 = vpop.f32.mrf.mxu3  ;;  %1173 = vmatpush.msra.mxu2 %v943_v23  ;;  %1196 = vmatpush.msrb.mxu0 %v1007_v27  ;;  %v971_v27 = vld [vmem:[#allocation10 + $0x668] sm:$0xff] }
  0xcd   :  { %1128 = vmatpush.msrb.mxu3 %v811_v28  ;;  %1151 = vmatpush.msra.mxu1 %v875_v42 }
  0xce   :  { %1174 = vmatpush.msra.mxu2 %v939_v30 }
  0xcf   :  { %1129 = vmatpush.msrb.mxu3 %v807_v33  ;;  %1152 = vmatpush.msra.mxu1 %v871_v49  ;;  %v1003_v33 = vld [vmem:[#allocation10 + $0x768] sm:$0xff] }
  0xd0   :  { %1197 = vmatpush.msrb.mxu0 %v1003_v33  ;;  %v995_v49 = vld [vmem:[#allocation10 + $0x728] sm:$0xff] }
  0xd1   :  { %1130 = vmatpush.msrb.mxu3 %v803_v37  ;;  %1153 = vmatpush.msra.mxu1 %v867_v56  ;;  %v935_v37 = vld [vmem:[#allocation10 + $0x548] sm:$0xff] }
  0xd2   :  { %1175 = vmatpush.msra.mxu2 %v935_v37  ;;  %v967_v37 = vld [vmem:[#allocation10 + $0x648] sm:$0xff] }
  0xd3   :  { %1131 = vmatpush.msrb.mxu3 %v799_v41  ;;  %1154 = vmatpush.msra.mxu1 %v863_v62  ;;  %v999_v41 = vld [vmem:[#allocation10 + $0x748] sm:$0xff] }
  0xd4   :  { %1198 = vmatpush.msrb.mxu0 %v999_v41 }
  0xd5   :  { %1132 = vmatpush.msrb.mxu3 %v795_v48  ;;  %1155 = vmatpush.msra.mxu1 %v859_v3  ;;  %v931_v48 = vld [vmem:[#allocation10 + $0x528] sm:$0xff] }
  0xd6   :  { %1176 = vmatpush.msra.mxu2 %v931_v48  ;;  %1199 = vmatpush.msrb.mxu0 %v995_v49  ;;  %v919_v3 = vld [vmem:[#allocation10 + $0x4c8] sm:$0xff] }
  0xd7   :  { %1133 = vmatpush.msrb.mxu3 %v791_v54  ;;  %1156 = vmatpush.msra.mxu1 %v855_v16  ;;  %v963_v48 = vld [vmem:[#allocation10 + $0x628] sm:$0xff] }
  0xd8   :  { %1200 = vmatpush.msrb.mxu0 %v991_v59  ;;  %v959_v59 = vld [vmem:[#allocation10 + $0x608] sm:$0xff] }
  0xd9   :  { %1134 = vmatpush.msrb.mxu3 %v787_v61  ;;  %v987_v61 = vld [vmem:[#allocation10 + $0x6e8] sm:$0xff] }
  0xda   :  { %1201 = vmatpush.msrb.mxu0 %v987_v61 }
  0xdc   :  { %1202 = vmatpush.msrb.mxu0 %v983_v4 }
 0x11a   :  { %v429_v52 = vpop.f32.mrf.mxu0  ;;  %v452_v53 = vpop.f32.mrf.mxu1 }
 0x11b   :  { %v430_v57 = vadd.f32 %v429_v52, %v2304_v55  ;;  %v783_v55 = vld [vmem:[#allocation10 + $0x88] sm:$0xff] }
 0x11c   :  { %1135 = vmatpush.msrb.mxu3 %v783_v55  ;;  %v601_v55 = vperm.slane %v2323_v47, 3 }
 0x11d   :  { %v453_v0 = vadd.f32 %v452_v53, %v430_v57  ;;  %v835_v57 = vld [vmem:[#allocation10 + $0x228] sm:$0xff] }
 0x11e   :  { %1136 = vmatpush.msrb.mxu3 %v779_v15 }
 0x11f   :  { %v2327_v2 = vadd.f32 %v598_v58, %v453_v0 }
 0x120   :  { %1137 = vmatpush.msrb.mxu3 %v775_v22 }
 0x121   :  { %v614_v5 = vsub.f32 0.0, %v2327_v2  ;;  %v475_v6 = vpop.f32.mrf.mxu2  ;;  %v498_v8 = vpop.f32.mrf.mxu3 }
 0x122   :  { %v476_v10 = vadd.f32 %v475_v6, %v2308_v14  ;;  %v432_v12 = vpop.f32.mrf.mxu0  ;;  %v455_v13 = vpop.f32.mrf.mxu1  ;;  %v851_v14 = vld [vmem:[#allocation10 + $0x2a8] sm:$0xff] }
 0x123   :  { %v622_v18 = vmul.f32 1.442695, %v614_v5  ;;  %v433_v19 = vadd.f32 %v432_v12, %v2306_v7  ;;  %1157 = vmatpush.msra.mxu1 %v851_v14  ;;  %v771_v7 = vld [vmem:[#allocation10 + $0x28] sm:$0xff] }
 0x124   :  { %v499_v21 = vadd.f32 %v498_v8, %v476_v10  ;;  %1138 = vmatpush.msrb.mxu3 %v771_v7  ;;  %v979_v12 = vld [vmem:[#allocation10 + $0x6a8] sm:$0xff] }
 0x125   :  { %1926 = vpow2.f32 %v622_v18  ;;  %v456_v26 = vadd.f32 %v455_v13, %v433_v19  ;;  %1158 = vmatpush.msra.mxu1 %v847_v29  ;;  %1203 = vmatpush.msrb.mxu0 %v979_v12 }
 0x126   :  { %v2335_v28 = vadd.f32 %v599_v11, %v499_v21  ;;  %1139 = vmatpush.msrb.mxu3 %v767_v35  ;;  %v975_v21 = vld [vmem:[#allocation10 + $0x688] sm:$0xff] }
 0x127   :  { %v2337_v31 = vadd.f32 %v598_v58, %v456_v26  ;;  %1159 = vmatpush.msra.mxu1 %v843_v36  ;;  %v927_v58 = vld [vmem:[#allocation10 + $0x508] sm:$0xff]  ;;  %1204 = vmatpush.msrb.mxu0 %v975_v21 }
 0x128   :  { %v615_v34 = vsub.f32 0.0, %v2335_v28  ;;  %1177 = vmatpush.msra.mxu2 %v927_v58  ;;  %v907_v26 = vld [vmem:[#allocation10 + $0x468] sm:$0xff] }
 0x129   :  { %v618_v38 = vsub.f32 0.0, %v2337_v31  ;;  %v478_v39 = vpop.f32.mrf.mxu2  ;;  %v501_v40 = vpop.f32.mrf.mxu3  ;;  %1160 = vmatpush.msra.mxu1 %v839_v46  ;;  %1205 = vmatpush.msrb.mxu0 %v971_v27  ;;  %v903_v36 = vld [vmem:[#allocation10 + $0x448] sm:$0xff] }
 0x12a   :  { %v624_v42 = vmul.f32 1.442695, %v615_v34  ;;  %v479_v45 = vadd.f32 %v478_v39, %v2314_v32  ;;  %v521_v52 = vpop.f32.mrf.mxu1  ;;  %v567_v56 = vpop.f32.mrf.mxu0  ;;  %v831_v32 = vld [vmem:[#allocation10 + $0x208] sm:$0xff]  ;;  %1178 = vmatpush.msra.mxu2 %v923_v60 }
 0x12b   :  { %v1927_v50 = vpop.eup %1926  ;;  %v630_v51 = vmul.f32 1.442695, %v618_v38  ;;  %1161 = vmatpush.msra.mxu1 %v835_v57  ;;  %v522_v63 = vadd.f32 %v521_v52, %v2310_v24  ;;  %v568_v0 = vadd.f32 %v567_v56, %v2312_v25  ;;  %v915_v24 = vld [vmem:[#allocation10 + $0x4a8] sm:$0xff]  ;;  %1206 = vmatpush.msrb.mxu0 %v967_v37 }
 0x12c   :  { %v2342_v53 = vadd.f32 1.0, %v1927_v50  ;;  %1928 = vpow2.f32 %v624_v42  ;;  %v502_v54 = vadd.f32 %v501_v40, %v479_v45  ;;  %1179 = vmatpush.msra.mxu2 %v919_v3  ;;  %v895_v58 = vld [vmem:[#allocation10 + $0x408] sm:$0xff] }
 0x12d   :  { %1930 = vpow2.f32 %v630_v51  ;;  %1162 = vmatpush.msra.mxu1 %v831_v32  ;;  %1207 = vmatpush.msrb.mxu0 %v963_v48 }
 0x12e   :  { %1932 = vrcp.f32 %v2342_v53  ;;  %v2347_v62 = vadd.f32 %v599_v11, %v502_v54  ;;  %1180 = vmatpush.msra.mxu2 %v915_v24  ;;  %v655_v29 = vand.u32 2147483647, %v2342_v53  ;;  %v657_v30 = vand.u32 2147483648, %v2342_v53 }
 0x12f   :  { %vm651_vm2 = vweird.f32 %v2342_v53  ;;  %1208 = vmatpush.msrb.mxu0 %v959_v59 }
 0x130   :  { %v619_v5 = vsub.f32 0.0, %v2347_v62  ;;  %1181 = vmatpush.msra.mxu2 %v911_v20  ;;  %vm2382_vm3 = vcmp.eq.f32.partialorder %v655_v29, 8.507059e+37  ;;  %v658_v52 = vor.u32 1.1754944e-38, %v657_v30  ;;  %v816_v30 = vld [vmem:[#allocation10 + $0x190] sm:$0xff] }
 0x131   :  { %v544_v6 = vpop.f32.mrf.mxu3  ;;  %v590_v8 = vpop.f32.mrf.mxu2 }
 0x132   :  { %v1929_v9 = vpop.eup %1928  ;;  %v545_v10 = vadd.f32 %v544_v6, %v522_v63  ;;  %v591_v11 = vadd.f32 %v590_v8, %v568_v0  ;;  %v632_v15 = vmul.f32 1.442695, %v619_v5  ;;  %v524_v14 = vpop.f32.mrf.mxu1  ;;  %1182 = vmatpush.msra.mxu2 %v907_v26 }
 0x133   :  { %v1931_v25 = vpop.eup %1930  ;;  %v2354_v13 = vadd.f32 1.0, %v1929_v9  ;;  %v570_v23 = vpop.f32.mrf.mxu0  ;;  %v525_v35 = vadd.f32 %v524_v14, %v2316_v43  ;;  %v899_v43 = vld [vmem:[#allocation10 + $0x428] sm:$0xff] }
 0x134   :  { %v2356_v16 = vpop.eup %1932  ;;  %v2358_v17 = vadd.f32 1.0, %v1931_v25  ;;  %v2362_v18 = vadd.f32 %v600_v1, %v545_v10  ;;  %v2366_v19 = vadd.f32 %v601_v55, %v591_v11  ;;  %v571_v39 = vadd.f32 %v570_v23, %v2318_v44  ;;  %1183 = vmatpush.msra.mxu2 %v903_v36  ;;  %v828_v10 = vld [vmem:[#allocation10 + $0x1f0] sm:$0xff] }
 0x135   :  { %v647_v22 = vmul.f32 %v2356_v16, %v2342_v53  ;;  %1934 = vrcp.f32 %v2354_v13  ;;  %vm652_vm1 = vweird.f32 %v2356_v16  ;;  %v670_v56 = vand.u32 2147483647, %v2354_v13  ;;  %v820_v23 = vld [vmem:[#allocation10 + $0x1b0] sm:$0xff] }
 0x136   :  { %1936 = vrcp.f32 %v2358_v17  ;;  %v616_v33 = vsub.f32 0.0, %v2362_v18  ;;  %v617_v34 = vsub.f32 0.0, %v2366_v19  ;;  %vm653_vm4 = vmor %vm651_vm2, %vm652_vm1  ;;  %1184 = vmatpush.msra.mxu2 %v899_v43  ;;  %v672_v61 = vand.u32 2147483648, %v2354_v13  ;;  %v892_v36 = vld [vmem:[#allocation10 + $0x3f0] sm:$0xff] }
 0x137   :  { %v648_v7 = vsub.f32 1.0, %v647_v22  ;;  %1938 = vpow2.f32 %v632_v15  ;;  %v715_v8 = vand.u32 2147483647, %v2358_v17  ;;  %v717_v24 = vand.u32 2147483648, %v2358_v17  ;;  %v824_v15 = vld [vmem:[#allocation10 + $0x1d0] sm:$0xff] }
 0x138   :  { %v626_v42 = vmul.f32 1.442695, %v616_v33  ;;  %v628_v45 = vmul.f32 1.442695, %v617_v34  ;;  %1185 = vmatpush.msra.mxu2 %v895_v58  ;;  %vm666_vm7 = vweird.f32 %v2354_v13  ;;  %vm2420_vm8 = vcmp.eq.f32.partialorder %v670_v56, 8.507059e+37  ;;  %v884_v43 = vld [vmem:[#allocation10 + $0x3b0] sm:$0xff] }
 0x139   :  { %v649_v38 = vmul.f32 %v2356_v16, %v648_v7  ;;  %v547_v40 = vpop.f32.mrf.mxu3  ;;  %v593_v41 = vpop.f32.mrf.mxu2  ;;  %vm711_vm9 = vweird.f32 %v2358_v17  ;;  %v673_v21 = vor.u32 1.1754944e-38, %v672_v61  ;;  %vm716_vm12 = vcmp.eq.f32.partialorder %v715_v8, 8.507059e+37 }
 0x13a   :  { %v548_v46 = vadd.f32 %v547_v40, %v525_v35  ;;  %v594_v44 = vadd.f32 %v593_v41, %v571_v39  ;;  %1940 = vpow2.f32 %v626_v42  ;;  %v812_v39 = vld [vmem:[#allocation10 + $0x170] sm:$0xff] }
 0x13b   :  { %v1935_v49 = vpop.eup %1934  ;;  %v650_v50 = vadd.f32 %v2356_v16, %v649_v38  ;;  %1942 = vpow2.f32 %v628_v45  ;;  %v888_v40 = vld [vmem:[#allocation10 + $0x3d0] sm:$0xff] }
 0x13c   :  { %v2386_v54 = vpop.eup %1936  ;;  %v662_v53 = vmul.f32 %v1935_v49, %v2354_v13  ;;  %v2394_v57 = vadd.f32 %v600_v1, %v548_v46  ;;  %v2411_v9 = vadd.f32 %v601_v55, %v594_v44  ;;  %vm667_vm5 = vweird.f32 %v1935_v49 }
 0x13d   :  { %v1939_v32 = vpop.eup %1938  ;;  %v654_v60 = vsel %vm653_vm4, %v2356_v16, %v650_v50  ;;  %v707_v63 = vmul.f32 %v2386_v54, %v2358_v17  ;;  %vm712_vm6 = vweird.f32 %v2386_v54  ;;  %vm668_vm10 = vmor %vm666_vm7, %vm667_vm5  ;;  %v718_v13 = vor.u32 1.1754944e-38, %v717_v24  ;;  %v804_v50 = vld [vmem:[#allocation10 + $0x130] sm:$0xff] }
 0x13e   :  { %v659_v0 = vsel %vm2382_vm3, %v658_v52, %v654_v60  ;;  %v663_v3 = vsub.f32 1.0, %v662_v53  ;;  %v2402_v4 = vadd.f32 1.0, %v1939_v32  ;;  %v620_v1 = vsub.f32 0.0, %v2394_v57  ;;  %vm713_vm11 = vmor %vm711_vm9, %vm712_vm6  ;;  %v880_v52 = vld [vmem:[#allocation10 + $0x390] sm:$0xff] }
 0x13f   :  { %v2406_v5 = vmul.f32 %v659_v0, %v2327_v2  ;;  %v708_v6 = vsub.f32 1.0, %v707_v63  ;;  %v621_v25 = vsub.f32 0.0, %v2411_v9  ;;  %v800_v53 = vld [vmem:[#allocation10 + $0x110] sm:$0xff] }
 0x140   :  { %v664_v11 = vmul.f32 %v1935_v49, %v663_v3  ;;  %1944 = vrcp.f32 %v2402_v4  ;;  %v634_v2 = vmul.f32 1.442695, %v620_v1  ;;  %v1941_v47 = vpop.eup %1940  ;;  %v730_v45 = vand.u32 2147483647, %v2402_v4  ;;  %v876_v32 = vld [vmem:[#allocation10 + $0x370] sm:$0xff] }
 0x141   :  { %v709_v12 = vmul.f32 %v2386_v54, %v708_v6  ;;  %1048 = vmatmul.f32.vlgmr.msra.gmra.mxu3 %v2406_v5  ;;  %v1943_v20 = vpop.eup %1942  ;;  %v2427_v14 = vadd.f32 1.0, %v1941_v47  ;;  %v636_v29 = vmul.f32 1.442695, %v621_v25  ;;  %vm726_vm14 = vweird.f32 %v2402_v4  ;;  %v796_v3 = vld [vmem:[#allocation10 + $0xf0] sm:$0xff] }
 0x142   :  { %v665_v55 = vadd.f32 %v1935_v49, %v664_v11  ;;  %1216 = vmatpush.msra.mxu3 %v828_v10  ;;  %1946 = vpow2.f32 %v634_v2  ;;  %v2431_v27 = vadd.f32 1.0, %v1943_v20  ;;  %vm731_vm0 = vcmp.eq.f32.partialorder %v730_v45, 8.507059e+37  ;;  %v792_v2 = vld [vmem:[#allocation10 + $0xd0] sm:$0xff] }
 0x143   :  { %v710_v22 = vadd.f32 %v2386_v54, %v709_v12  ;;  %1948 = vrcp.f32 %v2427_v14  ;;  %v685_v63 = vand.u32 2147483647, %v2427_v14  ;;  %v687_v0 = vand.u32 2147483648, %v2427_v14  ;;  %v872_v12 = vld [vmem:[#allocation10 + $0x350] sm:$0xff] }
 0x144   :  { %v669_v26 = vsel %vm668_vm10, %v1935_v49, %v665_v55  ;;  %1217 = vmatpush.msra.mxu3 %v824_v15  ;;  %1950 = vrcp.f32 %v2431_v27  ;;  %vm681_vm2 = vweird.f32 %v2427_v14  ;;  %v700_v11 = vand.u32 2147483647, %v2431_v27  ;;  %v868_v16 = vld [vmem:[#allocation10 + $0x330] sm:$0xff] }
 0x145   :  { %v674_v17 = vsel %vm2420_vm8, %v673_v21, %v669_v26  ;;  %v714_v7 = vsel %vm713_vm11, %v2386_v54, %v710_v22  ;;  %1952 = vpow2.f32 %v636_v29  ;;  %v702_v24 = vand.u32 2147483648, %v2431_v27  ;;  %v788_v20 = vld [vmem:[#allocation10 + $0xb0] sm:$0xff] }
 0x146   :  { %v1945_v33 = vpop.eup %1944  ;;  %v2438_v34 = vmul.f32 %v674_v17, %v2335_v28  ;;  %v719_v35 = vsel %vm716_vm12, %v718_v13, %v714_v7  ;;  %1218 = vmatpush.msra.mxu3 %v820_v23  ;;  %v808_v28 = vld [vmem:[#allocation10 + $0x150] sm:$0xff]  ;;  %vm686_vm5 = vcmp.eq.f32.partialorder %v685_v63, 8.507059e+37  ;;  %vm696_vm6 = vweird.f32 %v2431_v27 }
 0x147   :  { %v2441_v37 = vmul.f32 %v719_v35, %v2337_v31  ;;  %v722_v38 = vmul.f32 %v1945_v33, %v2402_v4  ;;  %v732_v31 = vand.u32 2147483648, %v2402_v4  ;;  %vm727_vm13 = vweird.f32 %v1945_v33  ;;  %v864_v13 = vld [vmem:[#allocation10 + $0x310] sm:$0xff] }
 0x148   :  { %1071 = vmatmul.f32.vlgmr.msrb.gmra.mxu1 %v2438_v34  ;;  %1219 = vmatpush.msra.mxu3 %v816_v30  ;;  %v1947_v41 = vpop.eup %1946  ;;  %vm728_vm15 = vmor %vm726_vm14, %vm727_vm13  ;;  %v703_v23 = vor.u32 1.1754944e-38, %v702_v24  ;;  %vm701_vm8 = vcmp.eq.f32.partialorder %v700_v11, 8.507059e+37  ;;  %v784_v30 = vld [vmem:[#allocation10 + $0x90] sm:$0xff] }
 0x149   :  { %v723_v42 = vsub.f32 1.0, %v722_v38  ;;  %1239 = vmatpush.msrb.mxu1 %v892_v36  ;;  %1051 = vmatmul.f32.gmra.mxu3 %v2441_v37  ;;  %v2449_v46 = vadd.f32 1.0, %v1947_v41  ;;  %v1949_v48 = vpop.eup %1948  ;;  %v733_v56 = vor.u32 1.1754944e-38, %v732_v31  ;;  %v860_v38 = vld [vmem:[#allocation10 + $0x2f0] sm:$0xff] }
 0x14a   :  { %1220 = vmatpush.msra.mxu3 %v812_v39  ;;  %v677_v51 = vmul.f32 %v1949_v48, %v2427_v14  ;;  %v2453_v44 = vpop.eup %1950  ;;  %vm682_vm1 = vweird.f32 %v1949_v48  ;;  %v1016_v31 = vld [vmem:[#allocation10 + $0x7d0] sm:$0xff] }
 0x14b   :  { %v724_v49 = vmul.f32 %v1945_v33, %v723_v42  ;;  %1240 = vmatpush.msrb.mxu1 %v888_v40  ;;  %1954 = vrcp.f32 %v2449_v46  ;;  %v692_v59 = vmul.f32 %v2453_v44, %v2431_v27  ;;  %v1953_v60 = vpop.eup %1952  ;;  %vm697_vm3 = vweird.f32 %v2453_v44  ;;  %vm683_vm4 = vmor %vm681_vm2, %vm682_vm1  ;;  %v956_v27 = vld [vmem:[#allocation10 + $0x5f0] sm:$0xff] }
 0x14c   :  { %1221 = vmatpush.msra.mxu3 %v808_v28  ;;  %v678_v58 = vsub.f32 1.0, %v677_v51  ;;  %v2460_v8 = vadd.f32 1.0, %v1953_v60  ;;  %vm698_vm7 = vmor %vm696_vm6, %vm697_vm3  ;;  %v747_v29 = vand.u32 2147483648, %v2449_v46  ;;  %v745_v36 = vand.u32 2147483647, %v2449_v46  ;;  %v952_v28 = vld [vmem:[#allocation10 + $0x5d0] sm:$0xff] }
 0x14d   :  { %v725_v54 = vadd.f32 %v1945_v33, %v724_v49  ;;  %1241 = vmatpush.msrb.mxu1 %v884_v43  ;;  %v693_v6 = vsub.f32 1.0, %v692_v59  ;;  %vm741_vm10 = vweird.f32 %v2449_v46  ;;  %v856_v49 = vld [vmem:[#allocation10 + $0x2d0] sm:$0xff] }
 0x14e   :  { %1222 = vmatpush.msra.mxu3 %v804_v50  ;;  %v679_v1 = vmul.f32 %v1949_v48, %v678_v58  ;;  %1956 = vrcp.f32 %v2460_v8  ;;  %v748_v45 = vor.u32 1.1754944e-38, %v747_v29  ;;  %vm746_vm12 = vcmp.eq.f32.partialorder %v745_v36, 8.507059e+37  ;;  %v852_v58 = vld [vmem:[#allocation10 + $0x2b0] sm:$0xff]  ;;  %v813_v29 = vld [vmem:[#allocation10 + $0x178] sm:$0xff] }
 0x14f   :  { %v729_v61 = vsel %vm728_vm15, %v1945_v33, %v725_v54  ;;  %1242 = vmatpush.msrb.mxu1 %v880_v52  ;;  %v694_v47 = vmul.f32 %v2453_v44, %v693_v6  ;;  %v762_v51 = vand.u32 2147483648, %v2460_v8  ;;  %v1012_v52 = vld [vmem:[#allocation10 + $0x7b0] sm:$0xff]  ;;  %vm756_vm14 = vweird.f32 %v2460_v8  ;;  %v885_v36 = vld [vmem:[#allocation10 + $0x3b8] sm:$0xff] }
 0x150   :  { %v734_v4 = vsel %vm731_vm0, %v733_v56, %v729_v61  ;;  %1223 = vmatpush.msra.mxu3 %v800_v53  ;;  %v680_v15 = vadd.f32 %v1949_v48, %v679_v1  ;;  %v760_v56 = vand.u32 2147483647, %v2460_v8  ;;  %v944_v59 = vld [vmem:[#allocation10 + $0x590] sm:$0xff] }
 0x151   :  { %v2463_v10 = vmul.f32 %v734_v4, %v2347_v62  ;;  %1243 = vmatpush.msrb.mxu1 %v876_v32  ;;  %1140 = vmatmul.f32.vlgmr.msrb.gmra.mxu3 %v2406_v5  ;;  %v1955_v25 = vpop.eup %1954  ;;  %v688_v62 = vor.u32 1.1754944e-38, %v687_v0  ;;  %v695_v22 = vadd.f32 %v2453_v44, %v694_v47  ;;  %v1008_v32 = vld [vmem:[#allocation10 + $0x790] sm:$0xff] }
 0x152   :  { %1224 = vmatpush.msra.mxu3 %v796_v3  ;;  %v737_v55 = vmul.f32 %v1955_v25, %v2449_v46  ;;  %v684_v21 = vsel %vm683_vm4, %v1949_v48, %v680_v15  ;;  %vm742_vm9 = vweird.f32 %v1955_v25  ;;  %v948_v46 = vld [vmem:[#allocation10 + $0x5b0] sm:$0xff]  ;;  %vm761_vm0 = vcmp.eq.f32.partialorder %v760_v56, 8.507059e+37  ;;  %v789_v56 = vld [vmem:[#allocation10 + $0xb8] sm:$0xff] }
 0x153   :  { %1074 = vmatmul.f32.gmra.mxu1 %v2463_v10  ;;  %v689_v14 = vsel %vm686_vm5, %v688_v62, %v684_v21  ;;  %v699_v7 = vsel %vm698_vm7, %v2453_v44, %v695_v22  ;;  %vm743_vm11 = vmor %vm741_vm10, %vm742_vm9  ;;  %v776_v44 = vld [vmem:[#allocation10 + $0x50] sm:$0xff]  ;;  %v825_v62 = vld [vmem:[#allocation10 + $0x1d8] sm:$0xff] }
 0x154   :  { %1244 = vmatpush.msrb.mxu1 %v872_v12  ;;  %1225 = vmatpush.msra.mxu3 %v792_v2  ;;  %v738_v26 = vsub.f32 1.0, %v737_v55  ;;  %v2480_v17 = vmul.f32 %v689_v14, %v2362_v18  ;;  %v704_v33 = vsel %vm701_vm8, %v703_v23, %v699_v7  ;;  %v1957_v39 = vpop.eup %1956  ;;  %v1020_v18 = vld [vmem:[#allocation10 + $0x7f0] sm:$0xff]  ;;  %v829_v2 = vld [vmem:[#allocation10 + $0x1f8] sm:$0xff] }
 0x155   :  { %v2486_v40 = vmul.f32 %v704_v33, %v2366_v19  ;;  %v752_v42 = vmul.f32 %v1957_v39, %v2460_v8  ;;  %v780_v19 = vld [vmem:[#allocation10 + $0x70] sm:$0xff]  ;;  %vm757_vm13 = vweird.f32 %v1957_v39  ;;  %v817_v23 = vld [vmem:[#allocation10 + $0x198] sm:$0xff] }
 0x156   :  { %1245 = vmatpush.msrb.mxu1 %v868_v16  ;;  %1226 = vmatpush.msra.mxu3 %v788_v20  ;;  %v739_v35 = vmul.f32 %v1955_v25, %v738_v26  ;;  %v772_v61 = vld [vmem:[#allocation10 + $0x30] sm:$0xff]  ;;  %vm758_vm15 = vmor %vm756_vm14, %vm757_vm13  ;;  %v821_v20 = vld [vmem:[#allocation10 + $0x1b8] sm:$0xff] }
 0x157   :  { %1094 = vmatmul.f32.vlgmr.msrb.gmra.mxu2 %v2480_v17  ;;  %1117 = vmatmul.f32.vlgmr.msra.gmra.mxu0 %v2486_v40  ;;  %v753_v48 = vsub.f32 1.0, %v752_v42  ;;  %v848_v63 = vld [vmem:[#allocation10 + $0x290] sm:$0xff]  ;;  %v893_v26 = vld [vmem:[#allocation10 + $0x3f8] sm:$0xff] }
 0x158   :  { %1246 = vmatpush.msrb.mxu1 %v864_v13  ;;  %v740_v41 = vadd.f32 %v1955_v25, %v739_v35  ;;  %1262 = vmatpush.msrb.mxu2 %v956_v27  ;;  %v940_v0 = vld [vmem:[#allocation10 + $0x570] sm:$0xff]  ;;  %v889_v27 = vld [vmem:[#allocation10 + $0x3d8] sm:$0xff] }
 0x159   :  { %1227 = vmatpush.msra.mxu3 %v784_v30  ;;  %1285 = vmatpush.msra.mxu0 %v1020_v18  ;;  %v754_v53 = vmul.f32 %v1957_v39, %v753_v48  ;;  %v1004_v3 = vld [vmem:[#allocation10 + $0x770] sm:$0xff]  ;;  %v809_v35 = vld [vmem:[#allocation10 + $0x158] sm:$0xff] }
 0x15a   :  { %1247 = vmatpush.msrb.mxu1 %v860_v38  ;;  %v744_v43 = vsel %vm743_vm11, %v1955_v25, %v740_v41  ;;  %1263 = vmatpush.msrb.mxu2 %v952_v28  ;;  %v768_v1 = vld [vmem:[#allocation10 + $0x10] sm:$0xff]  ;;  %v805_v18 = vld [vmem:[#allocation10 + $0x138] sm:$0xff] }
 0x15b   :  { %1163 = vmatmul.f32.vlgmr.msra.gmra.mxu1 %v2438_v34  ;;  %v749_v50 = vsel %vm746_vm12, %v748_v45, %v744_v43  ;;  %1143 = vmatmul.f32.gmra.mxu3 %v2441_v37  ;;  %v755_v60 = vadd.f32 %v1957_v39, %v754_v53  ;;  %v844_v8 = vld [vmem:[#allocation10 + $0x270] sm:$0xff]  ;;  %v881_v41 = vld [vmem:[#allocation10 + $0x398] sm:$0xff] }
 0x15c   :  { %v2496_v54 = vmul.f32 %v749_v50, %v2394_v57  ;;  %1286 = vmatpush.msra.mxu0 %v1016_v31  ;;  %1228 = vmatpush.msra.mxu3 %v780_v19  ;;  %v763_v57 = vor.u32 1.1754944e-38, %v762_v51  ;;  %v936_v24 = vld [vmem:[#allocation10 + $0x550] sm:$0xff]  ;;  %v801_v45 = vld [vmem:[#allocation10 + $0x118] sm:$0xff] }
 0x15d   :  { %1248 = vmatpush.msrb.mxu1 %v856_v49  ;;  %1264 = vmatpush.msrb.mxu2 %v948_v46  ;;  %v759_v4 = vsel %vm758_vm15, %v1957_v39, %v755_v60  ;;  %v1000_v12 = vld [vmem:[#allocation10 + $0x750] sm:$0xff]  ;;  %v877_v31 = vld [vmem:[#allocation10 + $0x378] sm:$0xff] }
 0x15e   :  { %1287 = vmatpush.msra.mxu0 %v1012_v52  ;;  %1229 = vmatpush.msra.mxu3 %v776_v44  ;;  %v764_v6 = vsel %vm761_vm0, %v763_v57, %v759_v4  ;;  %v840_v25 = vld [vmem:[#allocation10 + $0x250] sm:$0xff]  ;;  %v797_v48 = vld [vmem:[#allocation10 + $0xf8] sm:$0xff] }
 0x15f   :  { %1249 = vmatpush.msrb.mxu1 %v852_v58  ;;  %1265 = vmatpush.msrb.mxu2 %v944_v59  ;;  %v2503_v11 = vmul.f32 %v764_v6, %v2411_v9  ;;  %v932_v15 = vld [vmem:[#allocation10 + $0x530] sm:$0xff]  ;;  %v873_v49 = vld [vmem:[#allocation10 + $0x358] sm:$0xff] }
 0x160   :  { %1288 = vmatpush.msra.mxu0 %v1008_v32  ;;  %1097 = vmatmul.f32.gmra.mxu2 %v2496_v54  ;;  %v996_v47 = vld [vmem:[#allocation10 + $0x730] sm:$0xff]  ;;  %v793_v51 = vld [vmem:[#allocation10 + $0xd8] sm:$0xff] }
 0x161   :  { %1230 = vmatpush.msra.mxu3 %v772_v61  ;;  %1250 = vmatpush.msrb.mxu1 %v848_v63  ;;  %v836_v9 = vld [vmem:[#allocation10 + $0x230] sm:$0xff]  ;;  %v869_v52 = vld [vmem:[#allocation10 + $0x338] sm:$0xff] }
 0x162   :  { %1266 = vmatpush.msrb.mxu2 %v940_v0  ;;  %1289 = vmatpush.msra.mxu0 %v1004_v3  ;;  %v928_v55 = vld [vmem:[#allocation10 + $0x510] sm:$0xff]  ;;  %v865_v58 = vld [vmem:[#allocation10 + $0x318] sm:$0xff] }
 0x163   :  { %1166 = vmatmul.f32.gmra.mxu1 %v2463_v10  ;;  %1231 = vmatpush.msra.mxu3 %v768_v1  ;;  %v992_v16 = vld [vmem:[#allocation10 + $0x710] sm:$0xff]  ;;  %v957_v59 = vld [vmem:[#allocation10 + $0x5f8] sm:$0xff] }
 0x164   :  { %1120 = vmatmul.f32.gmra.mxu0 %v2503_v11  ;;  %1251 = vmatpush.msrb.mxu1 %v844_v8  ;;  %v832_v21 = vld [vmem:[#allocation10 + $0x210] sm:$0xff]  ;;  %v1021_v32 = vld [vmem:[#allocation10 + $0x7f8] sm:$0xff] }
 0x165   :  { %1267 = vmatpush.msrb.mxu2 %v936_v24  ;;  %1290 = vmatpush.msra.mxu0 %v1000_v12  ;;  %v924_v22 = vld [vmem:[#allocation10 + $0x4f0] sm:$0xff]  ;;  %v785_v60 = vld [vmem:[#allocation10 + $0x98] sm:$0xff] }
 0x166   :  { %1308 = vmatpush.msrb.mxu3 %v829_v2  ;;  %1252 = vmatpush.msrb.mxu1 %v840_v25  ;;  %v988_v14 = vld [vmem:[#allocation10 + $0x6f0] sm:$0xff]  ;;  %v861_v61 = vld [vmem:[#allocation10 + $0x2f8] sm:$0xff] }
 0x167   :  { %1232 = vmatmul.f32.vlgmr.msra.gmra.mxu3 %v2406_v5  ;;  %1268 = vmatpush.msrb.mxu2 %v932_v15  ;;  %v920_v13 = vld [vmem:[#allocation10 + $0x4d0] sm:$0xff]  ;;  %v953_v63 = vld [vmem:[#allocation10 + $0x5d8] sm:$0xff] }
 0x168   :  { %1291 = vmatpush.msra.mxu0 %v996_v47  ;;  %1309 = vmatpush.msrb.mxu3 %v825_v62  ;;  %v984_v7 = vld [vmem:[#allocation10 + $0x6d0] sm:$0xff]  ;;  %v1017_v57 = vld [vmem:[#allocation10 + $0x7d8] sm:$0xff] }
 0x169   :  { %1253 = vmatpush.msrb.mxu1 %v836_v9  ;;  %1269 = vmatpush.msrb.mxu2 %v928_v55  ;;  %v916_v30 = vld [vmem:[#allocation10 + $0x4b0] sm:$0xff]  ;;  %v781_v0 = vld [vmem:[#allocation10 + $0x78] sm:$0xff] }
 0x16a   :  { %1292 = vmatpush.msra.mxu0 %v992_v16  ;;  %1310 = vmatpush.msrb.mxu3 %v821_v20  ;;  %v980_v33 = vld [vmem:[#allocation10 + $0x6b0] sm:$0xff]  ;;  %v857_v3 = vld [vmem:[#allocation10 + $0x2d8] sm:$0xff] }
 0x16b   :  { %1186 = vmatmul.f32.vlgmr.msra.gmra.mxu2 %v2480_v17  ;;  %1254 = vmatpush.msrb.mxu1 %v832_v21  ;;  %v912_v38 = vld [vmem:[#allocation10 + $0x490] sm:$0xff]  ;;  %v949_v4 = vld [vmem:[#allocation10 + $0x5b8] sm:$0xff] }
 0x16c   :  { %1209 = vmatmul.f32.vlgmr.msrb.gmra.mxu0 %v2486_v40  ;;  %1270 = vmatpush.msrb.mxu2 %v924_v22  ;;  %v976_v39 = vld [vmem:[#allocation10 + $0x690] sm:$0xff]  ;;  %v1013_v1 = vld [vmem:[#allocation10 + $0x7b8] sm:$0xff] }
 0x16d   :  { %1293 = vmatpush.msra.mxu0 %v988_v14  ;;  %1311 = vmatpush.msrb.mxu3 %v817_v23  ;;  %v908_v42 = vld [vmem:[#allocation10 + $0x470] sm:$0xff]  ;;  %v777_v6 = vld [vmem:[#allocation10 + $0x58] sm:$0xff] }
 0x16e   :  { %1331 = vmatpush.msra.mxu1 %v893_v26  ;;  %1271 = vmatpush.msrb.mxu2 %v920_v13  ;;  %v972_v28 = vld [vmem:[#allocation10 + $0x670] sm:$0xff]  ;;  %v853_v8 = vld [vmem:[#allocation10 + $0x2b8] sm:$0xff] }
 0x16f   :  { %1255 = vmatmul.f32.vlgmr.msrb.gmra.mxu1 %v2438_v34  ;;  %1294 = vmatpush.msra.mxu0 %v984_v7  ;;  %v904_v19 = vld [vmem:[#allocation10 + $0x450] sm:$0xff]  ;;  %v945_v24 = vld [vmem:[#allocation10 + $0x598] sm:$0xff] }
 0x170   :  { %1312 = vmatpush.msrb.mxu3 %v813_v29  ;;  %1332 = vmatpush.msra.mxu1 %v889_v27  ;;  %v968_v43 = vld [vmem:[#allocation10 + $0x650] sm:$0xff]  ;;  %v1009_v12 = vld [vmem:[#allocation10 + $0x798] sm:$0xff] }
 0x171   :  { %1235 = vmatmul.f32.gmra.mxu3 %v2441_v37  ;;  %1272 = vmatpush.msrb.mxu2 %v916_v30  ;;  %v900_v46 = vld [vmem:[#allocation10 + $0x430] sm:$0xff]  ;;  %v773_v2 = vld [vmem:[#allocation10 + $0x38] sm:$0xff] }
 0x172   :  { %1295 = vmatpush.msra.mxu0 %v980_v33  ;;  %1313 = vmatpush.msrb.mxu3 %v809_v35  ;;  %v964_v50 = vld [vmem:[#allocation10 + $0x630] sm:$0xff]  ;;  %v849_v25 = vld [vmem:[#allocation10 + $0x298] sm:$0xff] }
 0x173   :  { %1333 = vmatpush.msra.mxu1 %v885_v36  ;;  %1273 = vmatpush.msrb.mxu2 %v912_v38  ;;  %v896_v44 = vld [vmem:[#allocation10 + $0x410] sm:$0xff]  ;;  %v941_v15 = vld [vmem:[#allocation10 + $0x578] sm:$0xff] }
 0x174   :  { %1296 = vmatpush.msra.mxu0 %v976_v39  ;;  %1314 = vmatpush.msrb.mxu3 %v805_v18  ;;  %v960_v53 = vld [vmem:[#allocation10 + $0x610] sm:$0xff]  ;;  %v1005_v47 = vld [vmem:[#allocation10 + $0x778] sm:$0xff] }
 0x175   :  { %1334 = vmatpush.msra.mxu1 %v881_v41  ;;  %1189 = vmatmul.f32.gmra.mxu2 %v2496_v54  ;;  %v769_v62 = vld [vmem:[#allocation10 + $0x18] sm:$0xff] }
 0x176   :  { %1212 = vmatmul.f32.gmra.mxu0 %v2503_v11  ;;  %1274 = vmatpush.msrb.mxu2 %v908_v42  ;;  %v845_v9 = vld [vmem:[#allocation10 + $0x278] sm:$0xff] }
 0x177   :  { %1297 = vmatpush.msra.mxu0 %v972_v28  ;;  %1315 = vmatpush.msrb.mxu3 %v801_v45  ;;  %v937_v55 = vld [vmem:[#allocation10 + $0x558] sm:$0xff]  ;;  %v1582_v45 = vld [vmem:[#allocation11 + $0xf0] sm:$0xff] }
 0x178   :  { %1335 = vmatpush.msra.mxu1 %v877_v31  ;;  %1275 = vmatpush.msrb.mxu2 %v904_v19  ;;  %v1001_v16 = vld [vmem:[#allocation10 + $0x758] sm:$0xff]  ;;  %v1578_v31 = vld [vmem:[#allocation11 + $0xd0] sm:$0xff]  ;;  %v1576_v19 = vld [vmem:[#allocation11 + $0xc0] sm:$0xff] }
 0x179   :  { %1258 = vmatmul.f32.gmra.mxu1 %v2463_v10  ;;  %1298 = vmatpush.msra.mxu0 %v968_v43  ;;  %v841_v20 = vld [vmem:[#allocation10 + $0x258] sm:$0xff]  ;;  %v1574_v43 = vld [vmem:[#allocation11 + $0xb0] sm:$0xff] }
 0x17a   :  { %1316 = vmatpush.msrb.mxu3 %v797_v48  ;;  %1336 = vmatpush.msra.mxu1 %v873_v49  ;;  %v933_v21 = vld [vmem:[#allocation10 + $0x538] sm:$0xff]  ;;  %v1572_v48 = vld [vmem:[#allocation11 + $0xa0] sm:$0xff]  ;;  %v1570_v49 = vld [vmem:[#allocation11 + $0x90] sm:$0xff] }
 0x17b   :  { %1276 = vmatpush.msrb.mxu2 %v900_v46  ;;  %1299 = vmatpush.msra.mxu0 %v964_v50  ;;  %v997_v22 = vld [vmem:[#allocation10 + $0x738] sm:$0xff]  ;;  %v1612_v46 = vld [vmem:[#allocation11 + $0x1e0] sm:$0xff] }
 0x17c   :  { %1317 = vmatpush.msrb.mxu3 %v793_v51  ;;  %1337 = vmatpush.msra.mxu1 %v869_v52  ;;  %v837_v14 = vld [vmem:[#allocation10 + $0x238] sm:$0xff]  ;;  %v1562_v51 = vld [vmem:[#allocation11 + $0x50] sm:$0xff] }
 0x17d   :  { %1277 = vmatpush.msrb.mxu2 %v896_v44  ;;  %1300 = vmatpush.msra.mxu0 %v960_v53  ;;  %v929_v23 = vld [vmem:[#allocation10 + $0x518] sm:$0xff]  ;;  %v1610_v52 = vld [vmem:[#allocation11 + $0x1d0] sm:$0xff] }
 0x17e   :  { %1318 = vmatpush.msrb.mxu3 %v789_v56  ;;  %1338 = vmatpush.msra.mxu1 %v865_v58  ;;  %v993_v26 = vld [vmem:[#allocation10 + $0x718] sm:$0xff]  ;;  %v1560_v56 = vld [vmem:[#allocation11 + $0x40] sm:$0xff] }
 0x17f   :  { %1354 = vmatpush.msra.mxu2 %v957_v59  ;;  %1377 = vmatpush.msrb.mxu0 %v1021_v32  ;;  %v833_v13 = vld [vmem:[#allocation10 + $0x218] sm:$0xff]  ;;  %v1608_v58 = vld [vmem:[#allocation11 + $0x1c0] sm:$0xff]  ;;  %v1558_v59 = vld [vmem:[#allocation11 + $0x30] sm:$0xff] }
 0x180   :  { %1278 = vmatmul.f32.vlgmr.msrb.gmra.mxu2 %v2480_v17  ;;  %1301 = vmatmul.f32.vlgmr.msra.gmra.mxu0 %v2486_v40  ;;  %v925_v7 = vld [vmem:[#allocation10 + $0x4f8] sm:$0xff]  ;;  %v1606_v32 = vld [vmem:[#allocation11 + $0x1b0] sm:$0xff] }
 0x181   :  { %1319 = vmatpush.msrb.mxu3 %v785_v60  ;;  %1339 = vmatpush.msra.mxu1 %v861_v61  ;;  %v989_v29 = vld [vmem:[#allocation10 + $0x6f8] sm:$0xff]  ;;  %v1556_v61 = vld [vmem:[#allocation11 + $0x20] sm:$0xff] }
 0x182   :  { %1355 = vmatpush.msra.mxu2 %v953_v63  ;;  %1378 = vmatpush.msrb.mxu0 %v1017_v57  ;;  %v921_v27 = vld [vmem:[#allocation10 + $0x4d8] sm:$0xff]  ;;  %v1604_v63 = vld [vmem:[#allocation11 + $0x1a0] sm:$0xff] }
 0x183   :  { %1320 = vmatpush.msrb.mxu3 %v781_v0  ;;  %1340 = vmatpush.msra.mxu1 %v857_v3  ;;  %v985_v30 = vld [vmem:[#allocation10 + $0x6d8] sm:$0xff]  ;;  %v1554_v0 = vld [vmem:[#allocation11 + $0x10] sm:$0xff] }
 0x184   :  { %1356 = vmatpush.msra.mxu2 %v949_v4  ;;  %1379 = vmatpush.msrb.mxu0 %v1013_v1  ;;  %v917_v33 = vld [vmem:[#allocation10 + $0x4b8] sm:$0xff]  ;;  %v1602_v3 = vld [vmem:[#allocation11 + $0x190] sm:$0xff]  ;;  %v1552_v1 = vld [vmem:[#allocation11] sm:$0xff] }
 0x185   :  { %1321 = vmatpush.msrb.mxu3 %v777_v6  ;;  %1341 = vmatpush.msra.mxu1 %v853_v8  ;;  %v913_v35 = vld [vmem:[#allocation10 + $0x498] sm:$0xff]  ;;  %v1600_v6 = vld [vmem:[#allocation11 + $0x180] sm:$0xff] }
 0x186   :  { %1357 = vmatpush.msra.mxu2 %v945_v24  ;;  %1380 = vmatpush.msrb.mxu0 %v1009_v12  ;;  %v977_v36 = vld [vmem:[#allocation10 + $0x698] sm:$0xff] }
 0x187   :  { %1322 = vmatpush.msrb.mxu3 %v773_v2  ;;  %1342 = vmatpush.msra.mxu1 %v849_v25  ;;  %v909_v38 = vld [vmem:[#allocation10 + $0x478] sm:$0xff] }
 0x188   :  { %1358 = vmatpush.msra.mxu2 %v941_v15  ;;  %1381 = vmatpush.msrb.mxu0 %v1005_v47  ;;  %v973_v39 = vld [vmem:[#allocation10 + $0x678] sm:$0xff]  ;;  %v1598_v15 = vld [vmem:[#allocation11 + $0x170] sm:$0xff] }
 0x189   :  { %1281 = vmatmul.f32.gmra.mxu2 %v2496_v54  ;;  %1304 = vmatmul.f32.gmra.mxu0 %v2503_v11  ;;  %v905_v18 = vld [vmem:[#allocation10 + $0x458] sm:$0xff]  ;;  %v1646_v47 = vld [vmem:[#allocation11 + $0x2f0] sm:$0xff] }
 0x18a   :  { %1323 = vmatpush.msrb.mxu3 %v769_v62  ;;  %1343 = vmatpush.msra.mxu1 %v845_v9  ;;  %v969_v41 = vld [vmem:[#allocation10 + $0x658] sm:$0xff]  ;;  %v1581_v62 = vld [vmem:[#allocation11 + $0xe8] sm:$0xff] }
 0x18b   :  { %1359 = vmatpush.msra.mxu2 %v937_v55  ;;  %1382 = vmatpush.msrb.mxu0 %v1001_v16  ;;  %v965_v42 = vld [vmem:[#allocation10 + $0x638] sm:$0xff]  ;;  %v1596_v55 = vld [vmem:[#allocation11 + $0x160] sm:$0xff] }
 0x18c   :  { %1324 = vmatmul.f32.vlgmr.msrb.gmra.mxu3 %v2406_v5  ;;  %1344 = vmatpush.msra.mxu1 %v841_v20  ;;  %v981_v5 = vld [vmem:[#allocation10 + $0x6b8] sm:$0xff]  ;;  %v1644_v16 = vld [vmem:[#allocation11 + $0x2e0] sm:$0xff] }
 0x18d   :  { %1360 = vmatpush.msra.mxu2 %v933_v21  ;;  %1383 = vmatpush.msrb.mxu0 %v997_v22  ;;  %v897_v28 = vld [vmem:[#allocation10 + $0x418] sm:$0xff] }
 0x18e   :  { %1345 = vmatpush.msra.mxu1 %v837_v14  ;;  %1686 = vmatpush.msra.mxu3 %v1582_v45  ;;  %v2530_v50 = vld [vmem:[%s2659_s8] sm:$0xf]  ;;  %v1594_v14 = vld [vmem:[#allocation11 + $0x150] sm:$0xff] }
 0x18f   :  { %1361 = vmatpush.msra.mxu2 %v929_v23  ;;  %1384 = vmatpush.msrb.mxu0 %v993_v26  ;;  %v1024_v44 = vperm.slane %v2530_v50, 0  ;;  %v1583_v24 = vld [vmem:[#allocation11 + $0xf8] sm:$0xff]  ;;  %v1642_v23 = vld [vmem:[#allocation11 + $0x2d0] sm:$0xff]  ;;  %v1577_v26 = vld [vmem:[#allocation11 + $0xc8] sm:$0xff] }
 0x190   :  { %1346 = vmatpush.msra.mxu1 %v833_v13  ;;  %v1579_v21 = vld [vmem:[#allocation11 + $0xd8] sm:$0xff] }
 0x191   :  { %1362 = vmatpush.msra.mxu2 %v925_v7  ;;  %1385 = vmatpush.msrb.mxu0 %v989_v29  ;;  %v1592_v29 = vld [vmem:[#allocation11 + $0x140] sm:$0xff]  ;;  %v1571_v45 = vld [vmem:[#allocation11 + $0x98] sm:$0xff] }
 0x192   :  { %1347 = vmatmul.f32.vlgmr.msra.gmra.mxu1 %v2438_v34  ;;  %v901_v34 = vld [vmem:[#allocation10 + $0x438] sm:$0xff] }
 0x193   :  { %1363 = vmatpush.msra.mxu2 %v921_v27  ;;  %1386 = vmatpush.msrb.mxu0 %v985_v30  ;;  %v1640_v27 = vld [vmem:[#allocation11 + $0x2c0] sm:$0xff] }
 0x194   :  { %1327 = vmatmul.f32.gmra.mxu3 %v2441_v37  ;;  %v961_v37 = vld [vmem:[#allocation10 + $0x618] sm:$0xff] }
 0x195   :  { %1364 = vmatpush.msra.mxu2 %v917_v33  ;;  %1387 = vmatpush.msrb.mxu0 %v981_v5  ;;  %v1575_v33 = vld [vmem:[#allocation11 + $0xb8] sm:$0xff] }
 0x197   :  { %1365 = vmatpush.msra.mxu2 %v913_v35  ;;  %1388 = vmatpush.msrb.mxu0 %v977_v36  ;;  %v1590_v35 = vld [vmem:[#allocation11 + $0x130] sm:$0xff] }
 0x198   :  { %v1638_v36 = vld [vmem:[#allocation11 + $0x2b0] sm:$0xff] }
 0x199   :  { %1366 = vmatpush.msra.mxu2 %v909_v38  ;;  %1389 = vmatpush.msrb.mxu0 %v973_v39  ;;  %v1573_v39 = vld [vmem:[#allocation11 + $0xa8] sm:$0xff] }
 0x19a   :  { %1350 = vmatmul.f32.gmra.mxu1 %v2463_v10  ;;  %v1580_v10 = vld [vmem:[#allocation11 + $0xe0] sm:$0xff] }
 0x19b   :  { %1367 = vmatpush.msra.mxu2 %v905_v18  ;;  %1390 = vmatpush.msrb.mxu0 %v969_v41  ;;  %v1025_v18 = vperm.slane %v2530_v50, 1 }
 0x19c   :  { %1687 = vmatpush.msra.mxu3 %v1580_v10  ;;  %v1586_v10 = vld [vmem:[#allocation11 + $0x110] sm:$0xff] }
 0x19d   :  { %1368 = vmatpush.msra.mxu2 %v901_v34  ;;  %1391 = vmatpush.msrb.mxu0 %v965_v42  ;;  %v1588_v42 = vld [vmem:[#allocation11 + $0x120] sm:$0xff] }
 0x19e   :  { %1688 = vmatpush.msra.mxu3 %v1578_v31  ;;  %v1634_v31 = vld [vmem:[#allocation11 + $0x290] sm:$0xff] }
 0x19f   :  { %1369 = vmatpush.msra.mxu2 %v897_v28  ;;  %1392 = vmatpush.msrb.mxu0 %v961_v37  ;;  %v1636_v28 = vld [vmem:[#allocation11 + $0x2a0] sm:$0xff] }
 0x1a0   :  { %1370 = vmatmul.f32.vlgmr.msra.gmra.mxu2 %v2480_v17  ;;  %1393 = vmatmul.f32.vlgmr.msrb.gmra.mxu0 %v2486_v40  ;;  %v1568_v17 = vld [vmem:[#allocation11 + $0x80] sm:$0xff]  ;;  %v1566_v40 = vld [vmem:[#allocation11 + $0x70] sm:$0xff] }
 0x1a1   :  { %1689 = vmatpush.msra.mxu3 %v1576_v19  ;;  %1732 = vmatpush.msrb.mxu2 %v1646_v47 }
 0x1a3   :  { %1690 = vmatpush.msra.mxu3 %v1574_v43  ;;  %1733 = vmatpush.msrb.mxu2 %v1644_v16  ;;  %v1569_v43 = vld [vmem:[#allocation11 + $0x88] sm:$0xff] }
 0x1a5   :  { %1691 = vmatpush.msra.mxu3 %v1572_v48  ;;  %1734 = vmatpush.msrb.mxu2 %v1642_v23 }
 0x1a7   :  { %1692 = vmatpush.msra.mxu3 %v1570_v49  ;;  %1735 = vmatpush.msrb.mxu2 %v1640_v27  ;;  %v1603_v27 = vld [vmem:[#allocation11 + $0x198] sm:$0xff] }
 0x1a8   :  { %1373 = vmatmul.f32.gmra.mxu2 %v2496_v54  ;;  %1396 = vmatmul.f32.gmra.mxu0 %v2503_v11  ;;  %v1614_v54 = vld [vmem:[#allocation11 + $0x1f0] sm:$0xff]  ;;  %v1564_v11 = vld [vmem:[#allocation11 + $0x60] sm:$0xff] }
 0x1a9   :  { %1693 = vmatpush.msra.mxu3 %v1568_v17  ;;  %1709 = vmatpush.msrb.mxu1 %v1614_v54  ;;  %v1584_v17 = vld [vmem:[#allocation11 + $0x100] sm:$0xff] }
 0x1aa   :  { %1736 = vmatpush.msrb.mxu2 %v1638_v36  ;;  %v1553_v36 = vld [vmem:[#allocation11 + $0x8] sm:$0xff] }
 0x1ab   :  { %1694 = vmatpush.msra.mxu3 %v1566_v40  ;;  %1710 = vmatpush.msrb.mxu1 %v1612_v46  ;;  %v1632_v40 = vld [vmem:[#allocation11 + $0x280] sm:$0xff]  ;;  %v1567_v46 = vld [vmem:[#allocation11 + $0x78] sm:$0xff] }
 0x1ac   :  { %1737 = vmatpush.msrb.mxu2 %v1636_v28 }
 0x1ad   :  { %1695 = vmatpush.msra.mxu3 %v1564_v11  ;;  %1711 = vmatpush.msrb.mxu1 %v1610_v52 }
 0x1ae   :  { %1738 = vmatpush.msrb.mxu2 %v1634_v31 }
 0x1af   :  { %1696 = vmatpush.msra.mxu3 %v1562_v51  ;;  %1712 = vmatpush.msrb.mxu1 %v1608_v58  ;;  %v1615_v51 = vld [vmem:[#allocation11 + $0x1f8] sm:$0xff] }
 0x1b0   :  { %1739 = vmatpush.msrb.mxu2 %v1632_v40 }
 0x1b1   :  { %1697 = vmatpush.msra.mxu3 %v1560_v56  ;;  %1713 = vmatpush.msrb.mxu1 %v1606_v32  ;;  %v1613_v56 = vld [vmem:[#allocation11 + $0x1e8] sm:$0xff] }
 0x1b3   :  { %1698 = vmatpush.msra.mxu3 %v1558_v59  ;;  %1714 = vmatpush.msrb.mxu1 %v1604_v63  ;;  %v1628_v59 = vld [vmem:[#allocation11 + $0x260] sm:$0xff] }
 0x1b5   :  { %1699 = vmatpush.msra.mxu3 %v1556_v61  ;;  %1715 = vmatpush.msrb.mxu1 %v1602_v3  ;;  %v1611_v61 = vld [vmem:[#allocation11 + $0x1d8] sm:$0xff] }
 0x1b7   :  { %1700 = vmatpush.msra.mxu3 %v1554_v0  ;;  %1716 = vmatpush.msrb.mxu1 %v1600_v6  ;;  %v1626_v0 = vld [vmem:[#allocation11 + $0x250] sm:$0xff] }
 0x1b9   :  { %1701 = vmatpush.msra.mxu3 %v1552_v1  ;;  %1717 = vmatpush.msrb.mxu1 %v1598_v15  ;;  %v1609_v1 = vld [vmem:[#allocation11 + $0x1c8] sm:$0xff] }
 0x1bb   :  { %1778 = vmatpush.msrb.mxu3 %v1583_v24  ;;  %1718 = vmatpush.msrb.mxu1 %v1596_v55  ;;  %v1622_v55 = vld [vmem:[#allocation11 + $0x230] sm:$0xff] }
 0x1bd   :  { %1779 = vmatpush.msrb.mxu3 %v1581_v62  ;;  %1719 = vmatpush.msrb.mxu1 %v1594_v14 }
 0x1bf   :  { %1780 = vmatpush.msrb.mxu3 %v1579_v21  ;;  %1720 = vmatpush.msrb.mxu1 %v1592_v29  ;;  %v1605_v21 = vld [vmem:[#allocation11 + $0x1a8] sm:$0xff]  ;;  %v1555_v29 = vld [vmem:[#allocation11 + $0x18] sm:$0xff] }
 0x1c1   :  { %1781 = vmatpush.msrb.mxu3 %v1577_v26  ;;  %1721 = vmatpush.msrb.mxu1 %v1590_v35  ;;  %v1620_v26 = vld [vmem:[#allocation11 + $0x220] sm:$0xff] }
 0x1c3   :  { %1782 = vmatpush.msrb.mxu3 %v1575_v33  ;;  %1722 = vmatpush.msrb.mxu1 %v1588_v42 }
 0x1c4   :  { %v1049_v53 = vpop.f32.mrf.mxu3 }
 0x1c5   :  { %v1050_v60 = vadd.f32 %v1049_v53, %v1024_v44  ;;  %v1072_v57 = vpop.f32.mrf.mxu1  ;;  %1783 = vmatpush.msrb.mxu3 %v1573_v39  ;;  %1723 = vmatpush.msrb.mxu1 %v1586_v10  ;;  %v1565_v53 = vld [vmem:[#allocation11 + $0x68] sm:$0xff] }
 0x1c7   :  { %v1073_v4 = vadd.f32 %v1072_v57, %v1050_v60  ;;  %1784 = vmatpush.msrb.mxu3 %v1571_v45  ;;  %1724 = vmatpush.msrb.mxu1 %v1584_v17  ;;  %v1563_v60 = vld [vmem:[#allocation11 + $0x58] sm:$0xff]  ;;  %v1026_v45 = vperm.slane %v2530_v50, 2  ;;  %v1676_v17 = vld [vmem:[#allocation11 + $0x3e0] sm:$0xff] }
 0x1c9   :  { %1785 = vmatpush.msrb.mxu3 %v1569_v43  ;;  %1801 = vmatpush.msra.mxu1 %v1615_v51  ;;  %v1647_v43 = vld [vmem:[#allocation11 + $0x2f8] sm:$0xff] }
 0x1cb   :  { %1786 = vmatpush.msrb.mxu3 %v1567_v46  ;;  %1802 = vmatpush.msra.mxu1 %v1613_v56  ;;  %v1645_v46 = vld [vmem:[#allocation11 + $0x2e8] sm:$0xff]  ;;  %v1674_v56 = vld [vmem:[#allocation11 + $0x3d0] sm:$0xff] }
 0x1cc   :  { %v1052_v12 = vpop.f32.mrf.mxu3 }
 0x1cd   :  { %v1053_v20 = vadd.f32 %v1052_v12, %v1024_v44  ;;  %v1630_v44 = vld [vmem:[#allocation11 + $0x270] sm:$0xff]  ;;  %1787 = vmatpush.msrb.mxu3 %v1565_v53  ;;  %1803 = vmatpush.msra.mxu1 %v1611_v61 }
 0x1ce   :  { %1740 = vmatpush.msrb.mxu2 %v1630_v44 }
 0x1cf   :  { %1788 = vmatpush.msrb.mxu3 %v1563_v60  ;;  %1804 = vmatpush.msra.mxu1 %v1609_v1  ;;  %v1643_v60 = vld [vmem:[#allocation11 + $0x2d8] sm:$0xff] }
 0x1d0   :  { %v1075_v13 = vpop.f32.mrf.mxu1  ;;  %1741 = vmatpush.msrb.mxu2 %v1628_v59 }
 0x1d1   :  { %v1076_v30 = vadd.f32 %v1075_v13, %v1053_v20  ;;  %v1557_v20 = vld [vmem:[#allocation11 + $0x28] sm:$0xff] }
 0x1d2   :  { %1742 = vmatpush.msrb.mxu2 %v1626_v0 }
 0x1d4   :  { %v1118_v2 = vpop.f32.mrf.mxu0  ;;  %v1141_v41 = vpop.f32.mrf.mxu3 }
 0x1d5   :  { %v1142_v49 = vadd.f32 %v1141_v41, %v1025_v18  ;;  %v1616_v41 = vld [vmem:[#allocation11 + $0x200] sm:$0xff] }
 0x1d8   :  { %v1164_v52 = vpop.f32.mrf.mxu1 }
 0x1d9   :  { %v1165_v58 = vadd.f32 %v1164_v52, %v1142_v49 }
 0x1da   :  { %v1095_v8 = vpop.f32.mrf.mxu2 }
 0x1db   :  { %v1096_v25 = vadd.f32 %v1095_v8, %v1073_v4  ;;  %v1561_v4 = vld [vmem:[#allocation11 + $0x48] sm:$0xff]  ;;  %v1624_v8 = vld [vmem:[#allocation11 + $0x240] sm:$0xff] }
 0x1dc   :  { %1789 = vmatpush.msrb.mxu3 %v1561_v4  ;;  %1743 = vmatpush.msrb.mxu2 %v1624_v8  ;;  %v1641_v4 = vld [vmem:[#allocation11 + $0x2c8] sm:$0xff] }
 0x1dd   :  { %v2533_v9 = vadd.f32 %v1118_v2, %v1096_v25  ;;  %v1559_v2 = vld [vmem:[#allocation11 + $0x38] sm:$0xff] }
 0x1de   :  { %v1144_v63 = vpop.f32.mrf.mxu3  ;;  %v1607_v25 = vld [vmem:[#allocation11 + $0x1b8] sm:$0xff]  ;;  %1790 = vmatpush.msrb.mxu3 %v1559_v2  ;;  %1744 = vmatpush.msrb.mxu2 %v1622_v55 }
 0x1df   :  { %v1400_v22 = vsub.f32 0.0, %v2533_v9  ;;  %v1145_v12 = vadd.f32 %v1144_v63, %v1025_v18  ;;  %1805 = vmatpush.msra.mxu1 %v1607_v25  ;;  %v1672_v63 = vld [vmem:[#allocation11 + $0x3c0] sm:$0xff]  ;;  %v1591_v2 = vld [vmem:[#allocation11 + $0x138] sm:$0xff] }
 0x1e0   :  { %v1167_v14 = vpop.f32.mrf.mxu1  ;;  %1791 = vmatpush.msrb.mxu3 %v1557_v20  ;;  %1745 = vmatpush.msrb.mxu2 %v1620_v26  ;;  %v1639_v25 = vld [vmem:[#allocation11 + $0x2b8] sm:$0xff] }
 0x1e1   :  { %v1408_v7 = vmul.f32 1.442695, %v1400_v22  ;;  %v1121_v34 = vpop.f32.mrf.mxu0  ;;  %1806 = vmatpush.msra.mxu1 %v1605_v21 }
 0x1e2   :  { %1792 = vmatpush.msrb.mxu3 %v1555_v29 }
 0x1e3   :  { %1958 = vpow2.f32 %v1408_v7  ;;  %v1098_v5 = vpop.f32.mrf.mxu2  ;;  %v1168_v7 = vadd.f32 %v1167_v14, %v1145_v12  ;;  %1807 = vmatpush.msra.mxu1 %v1603_v27  ;;  %v1589_v14 = vld [vmem:[#allocation11 + $0x128] sm:$0xff]  ;;  %v1587_v27 = vld [vmem:[#allocation11 + $0x118] sm:$0xff] }
 0x1e4   :  { %v1099_v38 = vadd.f32 %v1098_v5, %v1076_v30  ;;  %v1618_v5 = vld [vmem:[#allocation11 + $0x210] sm:$0xff]  ;;  %1793 = vmatpush.msrb.mxu3 %v1553_v36 }
 0x1e5   :  { %1746 = vmatpush.msrb.mxu2 %v1618_v5 }
 0x1e6   :  { %v2537_v37 = vadd.f32 %v1121_v34, %v1099_v38  ;;  %v1601_v38 = vld [vmem:[#allocation11 + $0x188] sm:$0xff]  ;;  %v1678_v34 = vld [vmem:[#allocation11 + $0x3f0] sm:$0xff] }
 0x1e7   :  { %1808 = vmatpush.msra.mxu1 %v1601_v38  ;;  %1747 = vmatpush.msrb.mxu2 %v1616_v41  ;;  %v1664_v38 = vld [vmem:[#allocation11 + $0x380] sm:$0xff]  ;;  %v1585_v41 = vld [vmem:[#allocation11 + $0x108] sm:$0xff] }
 0x1e8   :  { %v1404_v19 = vsub.f32 0.0, %v2537_v37  ;;  %1755 = vmatpush.msra.mxu0 %v1678_v34  ;;  %v1633_v34 = vld [vmem:[#allocation11 + $0x288] sm:$0xff] }
 0x1e9   :  { %v1959_v48 = vpop.eup %1958  ;;  %v1210_v3 = vpop.f32.mrf.mxu0  ;;  %1824 = vmatpush.msra.mxu2 %v1647_v43 }
 0x1ea   :  { %v2540_v54 = vadd.f32 1.0, %v1959_v48  ;;  %v1416_v11 = vmul.f32 1.442695, %v1404_v19  ;;  %v1233_v10 = vpop.f32.mrf.mxu3  ;;  %v1599_v19 = vld [vmem:[#allocation11 + $0x178] sm:$0xff]  ;;  %1756 = vmatpush.msra.mxu0 %v1676_v17  ;;  %v1660_v17 = vld [vmem:[#allocation11 + $0x360] sm:$0xff] }
 0x1eb   :  { %1809 = vmatpush.msra.mxu1 %v1599_v19  ;;  %1825 = vmatpush.msra.mxu2 %v1645_v46 }
 0x1ec   :  { %1960 = vrcp.f32 %v2540_v54  ;;  %v1443_v13 = vand.u32 2147483648, %v2540_v54  ;;  %v1441_v33 = vand.u32 2147483647, %v2540_v54  ;;  %vm1437_vm2 = vweird.f32 %v2540_v54  ;;  %1757 = vmatpush.msra.mxu0 %v1674_v56  ;;  %v1627_v56 = vld [vmem:[#allocation11 + $0x258] sm:$0xff] }
 0x1ed   :  { %1962 = vpow2.f32 %v1416_v11  ;;  %v1597_v11 = vld [vmem:[#allocation11 + $0x168] sm:$0xff]  ;;  %1826 = vmatpush.msra.mxu2 %v1643_v60  ;;  %v1656_v60 = vld [vmem:[#allocation11 + $0x340] sm:$0xff] }
 0x1ee   :  { %v1187_v32 = vpop.f32.mrf.mxu2  ;;  %v1444_v28 = vor.u32 1.1754944e-38, %v1443_v13  ;;  %vm1442_vm4 = vcmp.eq.f32.partialorder %v1441_v33, 8.507059e+37  ;;  %1810 = vmatpush.msra.mxu1 %v1597_v11  ;;  %1758 = vmatpush.msra.mxu0 %v1672_v63  ;;  %v1666_v13 = vld [vmem:[#allocation11 + $0x390] sm:$0xff]  ;;  %v1625_v63 = vld [vmem:[#allocation11 + $0x248] sm:$0xff] }
 0x1ef   :  { %v1188_v57 = vadd.f32 %v1187_v32, %v1165_v58  ;;  %v1234_v58 = vadd.f32 %v1233_v10, %v1026_v45  ;;  %v1595_v32 = vld [vmem:[#allocation11 + $0x158] sm:$0xff]  ;;  %1827 = vmatpush.msra.mxu2 %v1641_v4 }
 0x1f0   :  { %1811 = vmatpush.msra.mxu1 %v1595_v32 }
 0x1f1   :  { %v2543_v6 = vadd.f32 %v1210_v3, %v1188_v57  ;;  %v1256_v57 = vpop.f32.mrf.mxu1  ;;  %v1593_v3 = vld [vmem:[#allocation11 + $0x148] sm:$0xff]  ;;  %1828 = vmatpush.msra.mxu2 %v1639_v25  ;;  %v1650_v25 = vld [vmem:[#allocation11 + $0x310] sm:$0xff] }
 0x1f2   :  { %v2545_v24 = vpop.eup %1960  ;;  %1812 = vmatpush.msra.mxu1 %v1593_v3  ;;  %v1257_v12 = vadd.f32 %v1256_v57, %v1234_v58  ;;  %v1654_v3 = vld [vmem:[#allocation11 + $0x330] sm:$0xff] }
 0x1f3   :  { %v1963_v15 = vpop.eup %1962  ;;  %v1433_v47 = vmul.f32 %v2545_v24, %v2540_v54  ;;  %v1401_v62 = vsub.f32 0.0, %v2543_v6  ;;  %vm1438_vm1 = vweird.f32 %v2545_v24  ;;  %v1213_v31 = vpop.f32.mrf.mxu0 }
 0x1f4   :  { %v2550_v16 = vadd.f32 1.0, %v1963_v15  ;;  %vm2561_vm3 = vmor %vm1437_vm2, %vm1438_vm1  ;;  %1813 = vmatpush.msra.mxu1 %v1591_v2  ;;  %v1236_v55 = vpop.f32.mrf.mxu3  ;;  %v1652_v2 = vld [vmem:[#allocation11 + $0x320] sm:$0xff] }
 0x1f5   :  { %v1434_v22 = vsub.f32 1.0, %v1433_v47  ;;  %v1410_v23 = vmul.f32 1.442695, %v1401_v62  ;;  %v1668_v62 = vld [vmem:[#allocation11 + $0x3a0] sm:$0xff] }
 0x1f6   :  { %1964 = vrcp.f32 %v2550_v16  ;;  %v1503_v0 = vand.u32 2147483648, %v2550_v16  ;;  %v1501_v8 = vand.u32 2147483647, %v2550_v16  ;;  %vm1497_vm6 = vweird.f32 %v2550_v16  ;;  %1814 = vmatpush.msra.mxu1 %v1589_v14  ;;  %v1679_v14 = vld [vmem:[#allocation11 + $0x3f8] sm:$0xff] }
 0x1f7   :  { %v1435_v30 = vmul.f32 %v2545_v24, %v1434_v22  ;;  %1966 = vpow2.f32 %v1410_v23  ;;  %v1637_v23 = vld [vmem:[#allocation11 + $0x2a8] sm:$0xff] }
 0x1f8   :  { %v1190_v35 = vpop.f32.mrf.mxu2  ;;  %v1504_v22 = vor.u32 1.1754944e-38, %v1503_v0  ;;  %vm1502_vm8 = vcmp.eq.f32.partialorder %v1501_v8, 8.507059e+37  ;;  %1829 = vmatpush.msra.mxu2 %v1637_v23  ;;  %1815 = vmatpush.msra.mxu1 %v1587_v27 }
 0x1f9   :  { %v1436_v39 = vadd.f32 %v2545_v24, %v1435_v30  ;;  %v1191_v18 = vadd.f32 %v1190_v35, %v1168_v7  ;;  %v1635_v30 = vld [vmem:[#allocation11 + $0x298] sm:$0xff]  ;;  %v1237_v35 = vadd.f32 %v1236_v55, %v1026_v45  ;;  %v1259_v10 = vpop.f32.mrf.mxu1  ;;  %v1648_v55 = vld [vmem:[#allocation11 + $0x300] sm:$0xff] }
 0x1fa   :  { %1830 = vmatpush.msra.mxu2 %v1635_v30  ;;  %1816 = vmatpush.msra.mxu1 %v1585_v41 }
 0x1fb   :  { %v1440_v48 = vsel %vm2561_vm3, %v2545_v24, %v1436_v39  ;;  %v2569_v49 = vadd.f32 %v1213_v31, %v1191_v18  ;;  %v1670_v24 = vld [vmem:[#allocation11 + $0x3b0] sm:$0xff]  ;;  %v1631_v31 = vld [vmem:[#allocation11 + $0x278] sm:$0xff] }
 0x1fc   :  { %v1965_v40 = vpop.eup %1964  ;;  %v1445_v54 = vsel %vm1442_vm4, %v1444_v28, %v1440_v48  ;;  %1759 = vmatpush.msra.mxu0 %v1670_v24  ;;  %v1662_v28 = vld [vmem:[#allocation11 + $0x370] sm:$0xff]  ;;  %1831 = vmatpush.msra.mxu2 %v1633_v34  ;;  %v1260_v48 = vadd.f32 %v1259_v10, %v1237_v35  ;;  %v1675_v35 = vld [vmem:[#allocation11 + $0x3d8] sm:$0xff] }
 0x1fd   :  { %v1967_v51 = vpop.eup %1966  ;;  %v2572_v52 = vmul.f32 %v1445_v54, %v2533_v9  ;;  %v1405_v44 = vsub.f32 0.0, %v2569_v49  ;;  %v1493_v53 = vmul.f32 %v1965_v40, %v2550_v16  ;;  %vm1498_vm5 = vweird.f32 %v1965_v40  ;;  %v1302_v20 = vpop.f32.mrf.mxu0  ;;  %v1629_v54 = vld [vmem:[#allocation11 + $0x268] sm:$0xff] }
 0x1fe   :  { %v2578_v59 = vadd.f32 1.0, %v1967_v51  ;;  %vm1499_vm7 = vmor %vm1497_vm6, %vm1498_vm5  ;;  %1760 = vmatpush.msra.mxu0 %v1668_v62  ;;  %1832 = vmatpush.msra.mxu2 %v1631_v31  ;;  %v1658_v51 = vld [vmem:[#allocation11 + $0x350] sm:$0xff]  ;;  %v1619_v62 = vld [vmem:[#allocation11 + $0x218] sm:$0xff] }
 0x1ff   :  { %v1418_v61 = vmul.f32 1.442695, %v1405_v44  ;;  %1702 = vmatmul.f32.vlgmr.msra.gmra.mxu3 %v2572_v52  ;;  %v1494_v9 = vsub.f32 1.0, %v1493_v53 }
 0x200   :  { %1968 = vrcp.f32 %v2578_v59  ;;  %1761 = vmatpush.msra.mxu0 %v1666_v13  ;;  %v1458_v45 = vand.u32 2147483648, %v2578_v59  ;;  %v1456_v43 = vand.u32 2147483647, %v2578_v59  ;;  %vm1452_vm10 = vweird.f32 %v2578_v59  ;;  %1833 = vmatpush.msra.mxu2 %v1629_v54 }
 0x201   :  { %1970 = vpow2.f32 %v1418_v61  ;;  %v1495_v1 = vmul.f32 %v1965_v40, %v1494_v9 }
 0x202   :  { %1762 = vmatpush.msra.mxu0 %v1664_v38  ;;  %v1459_v44 = vor.u32 1.1754944e-38, %v1458_v45  ;;  %vm1457_vm12 = vcmp.eq.f32.partialorder %v1456_v43, 8.507059e+37  ;;  %1834 = vmatpush.msra.mxu2 %v1627_v56  ;;  %v1665_v56 = vld [vmem:[#allocation11 + $0x388] sm:$0xff] }
 0x203   :  { %v1279_v15 = vpop.f32.mrf.mxu2  ;;  %v1496_v47 = vadd.f32 %v1965_v40, %v1495_v1  ;;  %v1623_v1 = vld [vmem:[#allocation11 + $0x238] sm:$0xff] }
 0x204   :  { %v1280_v21 = vadd.f32 %v1279_v15, %v1257_v12  ;;  %1763 = vmatpush.msra.mxu0 %v1662_v28  ;;  %1835 = vmatpush.msra.mxu2 %v1625_v63  ;;  %v1661_v63 = vld [vmem:[#allocation11 + $0x368] sm:$0xff] }
 0x205   :  { %v1500_v26 = vsel %vm1499_vm7, %v1965_v40, %v1496_v47 }
 0x206   :  { %v1969_v7 = vpop.eup %1968  ;;  %v2586_v29 = vadd.f32 %v1302_v20, %v1280_v21  ;;  %v1505_v16 = vsel %vm1502_vm8, %v1504_v22, %v1500_v26  ;;  %1764 = vmatpush.msra.mxu0 %v1660_v17  ;;  %v1305_v53 = vpop.f32.mrf.mxu0  ;;  %1836 = vmatpush.msra.mxu2 %v1623_v1  ;;  %v1617_v22 = vld [vmem:[#allocation11 + $0x208] sm:$0xff]  ;;  %v1027_v26 = vperm.slane %v2530_v50, 3 }
 0x207   :  { %v1971_v33 = vpop.eup %1970  ;;  %v1448_v5 = vmul.f32 %v1969_v7, %v2578_v59  ;;  %v2592_v36 = vmul.f32 %v1505_v16, %v2537_v37  ;;  %vm1453_vm9 = vweird.f32 %v1969_v7 }
 0x208   :  { %v2594_v39 = vadd.f32 1.0, %v1971_v33  ;;  %v1402_v18 = vsub.f32 0.0, %v2586_v29  ;;  %vm1454_vm11 = vmor %vm1452_vm10, %vm1453_vm9  ;;  %1765 = vmatpush.msra.mxu0 %v1658_v51 }
 0x209   :  { %v1449_v42 = vsub.f32 1.0, %v1448_v5  ;;  %1705 = vmatmul.f32.gmra.mxu3 %v2592_v36 }
 0x20a   :  { %1972 = vrcp.f32 %v2594_v39  ;;  %v1412_v37 = vmul.f32 1.442695, %v1402_v18  ;;  %1766 = vmatpush.msra.mxu0 %v1656_v60  ;;  %v1516_v47 = vand.u32 2147483647, %v2594_v39  ;;  %vm1512_vm14 = vweird.f32 %v2594_v39  ;;  %v1673_v18 = vld [vmem:[#allocation11 + $0x3c8] sm:$0xff] }
 0x20b   :  { %v1450_v19 = vmul.f32 %v1969_v7, %v1449_v42  ;;  %v1671_v42 = vld [vmem:[#allocation11 + $0x3b8] sm:$0xff] }
 0x20c   :  { %1974 = vpow2.f32 %v1412_v37  ;;  %v1282_v40 = vpop.f32.mrf.mxu2  ;;  %1767 = vmatpush.msra.mxu0 %v1654_v3  ;;  %vm1517_vm0 = vcmp.eq.f32.partialorder %v1516_v47, 8.507059e+37  ;;  %v1669_v37 = vld [vmem:[#allocation11 + $0x3a8] sm:$0xff] }
 0x20d   :  { %v1451_v11 = vadd.f32 %v1969_v7, %v1450_v19  ;;  %v1283_v46 = vadd.f32 %v1282_v40, %v1260_v48  ;;  %v1667_v40 = vld [vmem:[#allocation11 + $0x398] sm:$0xff] }
 0x20e   :  { %1768 = vmatpush.msra.mxu0 %v1652_v2 }
 0x20f   :  { %v1455_v58 = vsel %vm1454_vm11, %v1969_v7, %v1451_v11  ;;  %v2602_v32 = vadd.f32 %v1305_v53, %v1283_v46  ;;  %v1325_v20 = vpop.f32.mrf.mxu3  ;;  %v1677_v7 = vld [vmem:[#allocation11 + $0x3e8] sm:$0xff]  ;;  %v1348_v50 = vpop.f32.mrf.mxu1 }
 0x210   :  { %v1973_v61 = vpop.eup %1972  ;;  %v1460_v9 = vsel %vm1457_vm12, %v1459_v44, %v1455_v58  ;;  %1769 = vmatpush.msra.mxu0 %v1650_v25 }
 0x211   :  { %v2605_v59 = vmul.f32 %v1460_v9, %v2543_v6  ;;  %v1406_v57 = vsub.f32 0.0, %v2602_v32  ;;  %1794 = vmatmul.f32.vlgmr.msrb.gmra.mxu3 %v2572_v52  ;;  %v1508_v0 = vmul.f32 %v1973_v61, %v2594_v39  ;;  %v1621_v6 = vld [vmem:[#allocation11 + $0x228] sm:$0xff]  ;;  %v1518_v52 = vand.u32 2147483648, %v2594_v39  ;;  %v1663_v9 = vld [vmem:[#allocation11 + $0x378] sm:$0xff] }
 0x212   :  { %v1975_v4 = vpop.eup %1974  ;;  %vm1513_vm13 = vweird.f32 %v1973_v61  ;;  %1837 = vmatpush.msra.mxu2 %v1621_v6  ;;  %1770 = vmatpush.msra.mxu0 %v1648_v55  ;;  %v1326_v39 = vadd.f32 %v1325_v20, %v1027_v26  ;;  %v1655_v55 = vld [vmem:[#allocation11 + $0x338] sm:$0xff]  ;;  %v1653_v20 = vld [vmem:[#allocation11 + $0x328] sm:$0xff] }
 0x213   :  { %v2610_v8 = vadd.f32 1.0, %v1975_v4  ;;  %v1420_v24 = vmul.f32 1.442695, %v1406_v57  ;;  %1725 = vmatmul.f32.vlgmr.msrb.gmra.mxu1 %v2605_v59  ;;  %v1509_v12 = vsub.f32 1.0, %v1508_v0  ;;  %vm1514_vm15 = vmor %vm1512_vm14, %vm1513_vm13  ;;  %v1519_v23 = vor.u32 1.1754944e-38, %v1518_v52  ;;  %v1659_v4 = vld [vmem:[#allocation11 + $0x358] sm:$0xff] }
 0x214   :  { %1838 = vmatpush.msra.mxu2 %v1619_v62  ;;  %1847 = vmatpush.msrb.mxu0 %v1679_v14  ;;  %v1349_v45 = vadd.f32 %v1348_v50, %v1326_v39  ;;  %v1651_v14 = vld [vmem:[#allocation11 + $0x318] sm:$0xff] }
 0x215   :  { %1976 = vrcp.f32 %v2610_v8  ;;  %v1510_v15 = vmul.f32 %v1973_v61, %v1509_v12  ;;  %v1473_v41 = vand.u32 2147483648, %v2610_v8  ;;  %vm1467_vm2 = vweird.f32 %v2610_v8  ;;  %v1657_v12 = vld [vmem:[#allocation11 + $0x348] sm:$0xff] }
 0x216   :  { %1978 = vpow2.f32 %v1420_v24  ;;  %1839 = vmatpush.msra.mxu2 %v1617_v22  ;;  %1848 = vmatpush.msrb.mxu0 %v1677_v7 }
 0x217   :  { %v1511_v21 = vadd.f32 %v1973_v61, %v1510_v15  ;;  %v1328_v10 = vpop.f32.mrf.mxu3  ;;  %v1474_v31 = vor.u32 1.1754944e-38, %v1473_v41  ;;  %v1351_v58 = vpop.f32.mrf.mxu1 }
 0x218   :  { %1849 = vmatpush.msrb.mxu0 %v1675_v35  ;;  %v1329_v46 = vadd.f32 %v1328_v10, %v1027_v26  ;;  %v1649_v26 = vld [vmem:[#allocation11 + $0x308] sm:$0xff] }
 0x219   :  { %1797 = vmatmul.f32.gmra.mxu3 %v2592_v36  ;;  %v1515_v13 = vsel %vm1514_vm15, %v1973_v61, %v1511_v21 }
 0x21a   :  { %v1520_v27 = vsel %vm1517_vm0, %v1519_v23, %v1515_v13  ;;  %1850 = vmatpush.msrb.mxu0 %v1673_v18  ;;  %v1352_v57 = vadd.f32 %v1351_v58, %v1329_v46 }
 0x21b   :  { %v1977_v16 = vpop.eup %1976  ;;  %v2621_v5 = vmul.f32 %v1520_v27, %v2569_v49  ;;  %v1471_v49 = vand.u32 2147483647, %v2610_v8 }
 0x21c   :  { %v1979_v30 = vpop.eup %1978  ;;  %v1463_v33 = vmul.f32 %v1977_v16, %v2610_v8  ;;  %vm1468_vm1 = vweird.f32 %v1977_v16  ;;  %1851 = vmatpush.msrb.mxu0 %v1671_v42 }
 0x21d   :  { %v2623_v38 = vadd.f32 1.0, %v1979_v30  ;;  %1728 = vmatmul.f32.gmra.mxu1 %v2621_v5  ;;  %vm1469_vm3 = vmor %vm1467_vm2, %vm1468_vm1  ;;  %v1394_v19 = vpop.f32.mrf.mxu0  ;;  %vm1472_vm4 = vcmp.eq.f32.partialorder %v1471_v49, 8.507059e+37 }
 0x21e   :  { %v1464_v36 = vsub.f32 1.0, %v1463_v33  ;;  %1852 = vmatpush.msrb.mxu0 %v1669_v37 }
 0x21f   :  { %1980 = vrcp.f32 %v2623_v38  ;;  %v1533_v0 = vand.u32 2147483648, %v2623_v38  ;;  %vm1527_vm6 = vweird.f32 %v2623_v38 }
 0x220   :  { %v1465_v34 = vmul.f32 %v1977_v16, %v1464_v36  ;;  %1853 = vmatpush.msrb.mxu0 %v1667_v40 }
 0x221   :  { %v1534_v6 = vor.u32 1.1754944e-38, %v1533_v0 }
 0x222   :  { %v1466_v28 = vadd.f32 %v1977_v16, %v1465_v34  ;;  %1854 = vmatpush.msrb.mxu0 %v1665_v56 }
 0x223   :  { %v1371_v43 = vpop.f32.mrf.mxu2 }
 0x224   :  { %v1470_v48 = vsel %vm1469_vm3, %v1977_v16, %v1466_v28  ;;  %v1372_v17 = vadd.f32 %v1371_v43, %v1349_v45  ;;  %1855 = vmatpush.msrb.mxu0 %v1663_v9 }
 0x225   :  { %v1981_v54 = vpop.eup %1980  ;;  %v1475_v11 = vsel %vm1472_vm4, %v1474_v31, %v1470_v48  ;;  %1817 = vmatmul.f32.vlgmr.msra.gmra.mxu1 %v2605_v59  ;;  %v1531_v59 = vand.u32 2147483647, %v2623_v38  ;;  %v1397_v2 = vpop.f32.mrf.mxu0  ;;  %v1680_v48 = vld [vmem:[%s2661_s10] sm:$0x3]  ;;  %s2179_s10 = smov [#allocation13]  }
 0x226   :  { %v1476_v51 = vmul.f32 %v1475_v11, %v2586_v29  ;;  %v2631_v44 = vadd.f32 %v1394_v19, %v1372_v17  ;;  %v1523_v53 = vmul.f32 %v1981_v54, %v2623_v38  ;;  %vm1528_vm5 = vweird.f32 %v1981_v54  ;;  %1856 = vmatpush.msrb.mxu0 %v1661_v63  ;;  %s1878_s16 = sshll.u32 %s2179_s10, 4  ;;  %s1879_s16 = int_to_ptr.vmem [resolvable:$true] %s1878_s16 }
 0x227   :  { %vm1529_vm7 = vmor %vm1527_vm6, %vm1528_vm5  ;;  %vm1532_vm8 = vcmp.eq.f32.partialorder %v1531_v59, 8.507059e+37 }
 0x228   :  { %v1403_v60 = vsub.f32 0.0, %v2631_v44  ;;  %1748 = vmatmul.f32.vlgmr.msrb.gmra.mxu2 %v1476_v51  ;;  %v1524_v61 = vsub.f32 1.0, %v1523_v53  ;;  %1857 = vmatpush.msrb.mxu0 %v1659_v4 }
 0x22a   :  { %v1414_v29 = vmul.f32 1.442695, %v1403_v60  ;;  %v1525_v3 = vmul.f32 %v1981_v54, %v1524_v61  ;;  %1858 = vmatpush.msrb.mxu0 %v1657_v12 }
 0x22b   :  { %v1374_v1 = vpop.f32.mrf.mxu2 }
 0x22c   :  { %1982 = vpow2.f32 %v1414_v29  ;;  %v1375_v8 = vadd.f32 %v1374_v1, %v1352_v57  ;;  %v1526_v24 = vadd.f32 %v1981_v54, %v1525_v3  ;;  %1859 = vmatpush.msrb.mxu0 %v1655_v55  ;;  %v1683_v57 = vperm.slane %v1680_v48, 1 }
 0x22d   :  { %1820 = vmatmul.f32.gmra.mxu1 %v2621_v5 }
 0x22e   :  { %v1398_v52 = vadd.f32 %v1397_v2, %v1375_v8  ;;  %v1530_v25 = vsel %vm1529_vm7, %v1981_v54, %v1526_v24  ;;  %1860 = vmatpush.msrb.mxu0 %v1653_v20  ;;  %v1682_v54 = vperm.slane %v1680_v48, 0 }
 0x22f   :  { %v1535_v15 = vsel %vm1532_vm8, %v1534_v6, %v1530_v25 }
 0x230   :  { %v1407_v47 = vsub.f32 0.0, %v1398_v52  ;;  %v1536_v62 = vmul.f32 %v1535_v15, %v2602_v32  ;;  %1861 = vmatpush.msrb.mxu0 %v1651_v14 }
 0x232   :  { %v1983_v21 = vpop.eup %1982  ;;  %v1422_v22 = vmul.f32 1.442695, %v1407_v47  ;;  %1751 = vmatmul.f32.gmra.mxu2 %v1536_v62  ;;  %1862 = vmatpush.msrb.mxu0 %v1649_v26 }
 0x233   :  { %v1427_v23 = vadd.f32 1.0, %v1983_v21 }
 0x234   :  { %1984 = vpow2.f32 %v1422_v22 }
 0x235   :  { %1986 = vrcp.f32 %v1427_v23  ;;  %v1488_v30 = vand.u32 2147483648, %v1427_v23  ;;  %v1486_v5 = vand.u32 2147483647, %v1427_v23  ;;  %vm1482_vm10 = vweird.f32 %v1427_v23 }
 0x237   :  { %v1489_v36 = vor.u32 1.1754944e-38, %v1488_v30  ;;  %vm1487_vm12 = vcmp.eq.f32.partialorder %v1486_v5, 8.507059e+37 }
 0x23a   :  { %v1985_v13 = vpop.eup %1984  ;;  %1840 = vmatmul.f32.vlgmr.msra.gmra.mxu2 %v1476_v51 }
 0x23b   :  { %v1987_v7 = vpop.eup %1986  ;;  %v1431_v16 = vadd.f32 1.0, %v1985_v13 }
 0x23c   :  { %v1478_v27 = vmul.f32 %v1987_v7, %v1427_v23  ;;  %vm1483_vm9 = vweird.f32 %v1987_v7 }
 0x23d   :  { %1988 = vrcp.f32 %v1431_v16  ;;  %vm1484_vm11 = vmor %vm1482_vm10, %vm1483_vm9  ;;  %v1548_v49 = vand.u32 2147483648, %v1431_v16  ;;  %v1546_v28 = vand.u32 2147483647, %v1431_v16  ;;  %vm1542_vm14 = vweird.f32 %v1431_v16 }
 0x23e   :  { %v1479_v32 = vsub.f32 1.0, %v1478_v27 }
 0x23f   :  { %v1549_v10 = vor.u32 1.1754944e-38, %v1548_v49  ;;  %vm1547_vm0 = vcmp.eq.f32.partialorder %v1546_v28, 8.507059e+37 }
 0x240   :  { %v1480_v33 = vmul.f32 %v1987_v7, %v1479_v32 }
 0x242   :  { %v1481_v35 = vadd.f32 %v1987_v7, %v1480_v33  ;;  %1843 = vmatmul.f32.gmra.mxu2 %v1536_v62 }
 0x243   :  { %v1989_v38 = vpop.eup %1988 }
 0x244   :  { %v1485_v39 = vsel %vm1484_vm11, %v1987_v7, %v1481_v35  ;;  %v1538_v50 = vmul.f32 %v1989_v38, %v1431_v16  ;;  %vm1543_vm13 = vweird.f32 %v1989_v38 }
 0x245   :  { %v1490_v18 = vsel %vm1487_vm12, %v1489_v36, %v1485_v39  ;;  %vm1544_vm15 = vmor %vm1542_vm14, %vm1543_vm13 }
 0x246   :  { %v1491_v41 = vmul.f32 %v1490_v18, %v2631_v44  ;;  %v1539_v34 = vsub.f32 1.0, %v1538_v50 }
 0x248   :  { %1771 = vmatmul.f32.vlgmr.msra.gmra.mxu0 %v1491_v41  ;;  %v1540_v42 = vmul.f32 %v1989_v38, %v1539_v34 }
 0x24a   :  { %v1541_v45 = vadd.f32 %v1989_v38, %v1540_v42 }
 0x24c   :  { %v1545_v37 = vsel %vm1544_vm15, %v1989_v38, %v1541_v45 }
 0x24d   :  { %v1550_v31 = vsel %vm1547_vm0, %v1549_v10, %v1545_v37 }
 0x24e   :  { %v1551_v19 = vmul.f32 %v1550_v31, %v1398_v52 }
 0x250   :  { %1774 = vmatmul.f32.gmra.mxu0 %v1551_v19 }
 0x258   :  { %1863 = vmatmul.f32.vlgmr.msrb.gmra.mxu0 %v1491_v41 }
 0x260   :  { %1866 = vmatmul.f32.gmra.mxu0 %v1551_v19 }
 0x282   :  { %v1703_v43 = vpop.f32.mrf.mxu3 }
 0x283   :  { %v1704_v11 = vadd.f32 %v1703_v43, %v1682_v54 }
 0x28c   :  { %v1706_v46 = vpop.f32.mrf.mxu3 }
 0x28d   :  { %v1707_v61 = vadd.f32 %v1706_v46, %v1682_v54 }
 0x290   :  { %v1726_v17 = vpop.f32.mrf.mxu1 }
 0x291   :  { %v1727_v51 = vadd.f32 %v1726_v17, %v1704_v11 }
 0x294   :  { %v1795_v63 = vpop.f32.mrf.mxu3 }
 0x295   :  { %v1796_v1 = vadd.f32 %v1795_v63, %v1683_v57 }
 0x29a   :  { %v1729_v44 = vpop.f32.mrf.mxu1 }
 0x29b   :  { %v1730_v9 = vadd.f32 %v1729_v44, %v1707_v61 }
 0x29c   :  { %v1798_v12 = vpop.f32.mrf.mxu3 }
 0x29d   :  { %v1799_v25 = vadd.f32 %v1798_v12, %v1683_v57 }
 0x2a2   :  { %v1818_v29 = vpop.f32.mrf.mxu1 }
 0x2a3   :  { %v1819_v8 = vadd.f32 %v1818_v29, %v1796_v1 }
 0x2aa   :  { %v1821_v52 = vpop.f32.mrf.mxu1 }
 0x2ab   :  { %v1749_v40 = vpop.f32.mrf.mxu2  ;;  %v1822_v47 = vadd.f32 %v1821_v52, %v1799_v25 }
 0x2ac   :  { %v1750_v53 = vadd.f32 %v1749_v40, %v1727_v51 }
 0x2b5   :  { %v1752_v56 = vpop.f32.mrf.mxu2 }
 0x2b6   :  { %v1753_v0 = vadd.f32 %v1752_v56, %v1730_v9 }
 0x2bd   :  { %v1841_v4 = vpop.f32.mrf.mxu2 }
 0x2be   :  { %v1842_v24 = vadd.f32 %v1841_v4, %v1819_v8 }
 0x2c5   :  { %v1772_v58 = vpop.f32.mrf.mxu0  ;;  %v1844_v15 = vpop.f32.mrf.mxu2 }
 0x2c6   :  { %v1773_v60 = vadd.f32 %v1772_v58, %v1750_v53  ;;  %v1845_v62 = vadd.f32 %v1844_v15, %v1822_v47 }
 0x2c8   :  { %1870 = vst [vmem:[#allocation13] sm:$0xff] %v1773_v60 }
 0x2cd   :  { %v1775_v3 = vpop.f32.mrf.mxu0 }
 0x2ce   :  { %v1776_v59 = vadd.f32 %v1775_v3, %v1753_v0 }
 0x2d0   :  { %1872 = vst [vmem:[#allocation13 + $0x10] sm:$0xff] %v1776_v59 }
 0x2d5   :  { %v1864_v2 = vpop.f32.mrf.mxu0 }
 0x2d6   :  { %v1865_v6 = vadd.f32 %v1864_v2, %v1842_v24 }
 0x2d8   :  { %1871 = vst [vmem:[#allocation13 + $0x8] sm:$0xff] %v1865_v6 }
 0x2dd   :  { %v1867_v55 = vpop.f32.mrf.mxu0 }
 0x2de   :  { %v1868_v20 = vadd.f32 %v1867_v55, %v1845_v62 }
 0x2e0   :  { %1873 = vst [vmem:[#allocation13 + $0x18] sm:$0xff] %v1868_v20 }
 0x2e1   :  { %1886 = dma.vmem_to_hbm [thread:$0]  %s1879_s16, 512, %s1881_s19, [#allocation4], %s2173_s5, %s2173_s5, %s2174_s17  }
 0x2e2   :  { %2166 = dma.done.wait [#allocation4], 512  }
 0x2e3   :  { %2167 = vsyncadd [#allocation4], 4294966784 }
 0x2e4   :  { %1891 = vsyncpa [#allocation3], 1 }
 0x2e5   :  { %1892 = vsyncpa [#allocation6], 1 }
 0x2e6   :  { %1893 = vsyncpa [#allocation9], 1 }
 0x2e7   :  { %1894 = vsyncpa [#allocation12], 1 }
 0x2e8   :  { %1895 = vsyncpa [#allocation4], 1 }

</bundles_post_ra>
